<compile_context>
chip_gen: v6e
topology: v6e:2x2x1
jax: 0.10.0
libtpu: 0.0.40
codegen_flags: <defaults>
</compile_context>

<pallas_src>
import jax
import jax.numpy as jnp
from jax.experimental import pallas as pl
from jax.experimental.pallas import tpu as pltpu


def _round_up(v, m):
    return (v + m - 1) // m * m


def bottleneck_kernel(x_ref, w1_ref, b1_ref, w2_ref, b2_ref, w3_ref, b3_ref,
                      out_ref, pad_ref):
    _, H, W, Cin = x_ref.shape
    P = w1_ref.shape[1]
    Cout = w3_ref.shape[1]
    R = pad_ref.shape[0] // (H + 2)      # 8-aligned padded row stride, R >= W + 2
    M = (H - 1) * R + W                  # rows of the implicit-GEMM output
                                         # (valid output (y,x) lives at row y*R + x)

    # ---- conv1 (1x1, BN1 scale pre-folded into w1) + bias ----
    x2d = x_ref[0].reshape(H * W, Cin)                                   # f32
    h1 = jnp.dot(x2d.astype(jnp.bfloat16), w1_ref[...],
                 preferred_element_type=jnp.float32) + b1_ref[...]       # (H*W, P)
    h1b = h1.astype(jnp.bfloat16)

    # ---- zero-padded h1, flattened with row stride R (bf16 scratch) ----
    # Zero the whole buffer every grid step: scratch is per-TensorCore, so a
    # pl.when(program_id==0) init would miss the second core when the parallel
    # N axis is split across cores.  Padded pixel (yp, xp) lives at flat row
    # yp*R + xp; h1[y, x] is written to (y+1)*R + (x+1).  Columns [W+2, R) are
    # never read for valid outputs, so only real pad positions must be zero.
    pad_ref[...] = jnp.zeros_like(pad_ref)
    for y in range(H):
        pad_ref[pl.ds((y + 1) * R + 1, W), :] = h1b[y * W:(y + 1) * W, :]

    # ---- conv2 (3x3, stride=1, pad=1, BN2 folded) as implicit GEMM ----
    # Output row q (= y*R + x for output pixel (y, x)) needs padded pixel
    # (y+dy-1, x+dx-1) for tap (dy, dx), i.e. flat row q + dy*R + dx -- a
    # contiguous row window per tap, so the LHS is just a sliced view of the
    # flat padded buffer (no im2col slab, no reshape copies).
    acc = jnp.zeros((M, P), jnp.float32)
    for dy in range(3):
        for dx in range(3):
            lhs = pad_ref[pl.ds(dy * R + dx, M), :]                      # (M, P) bf16
            acc = acc + jnp.dot(lhs, w2_ref[dy * 3 + dx],
                                preferred_element_type=jnp.float32)
    h2 = acc + b2_ref[...]                                               # (M, P)

    # ---- conv3 (1x1, BN3 folded) + bias ----
    h3 = jnp.dot(h2.astype(jnp.bfloat16), w3_ref[...],
                 preferred_element_type=jnp.float32) + b3_ref[...]       # (M, Cout)

    # ---- residual add + ReLU; compact the R-strided rows while writing out ----
    # (downsample=None, stride=1  =>  residual = x)
    for y in range(H):
        row = jnp.maximum(x_ref[0, y] + h3[y * R:y * R + W, :], 0.0)     # (W, Cout)
        out_ref[0, y] = row.astype(out_ref.dtype)


def bottleneck_pallas(x, w1f, b1, w2f, b2, w3f, b3):
    """x: (N,H,W,Cin) f32.  w1f:(Cin,P), w2f:(9,P,P) tap-major (tap = dy*3+dx),
    w3f:(P,Cout) in bf16 with BN scales pre-folded.  b1/b2/b3: (1,C) f32 biases."""
    N, H, W, Cin = x.shape
    P = w1f.shape[1]
    Cout = w3f.shape[1]
    assert Cin == Cout, "downsample=None requires in_planes == expansion*planes"
    assert w2f.shape == (9, P, P)

    R = _round_up(W + 2, 8)              # 8-aligned row stride of the padded buffer
    pad_rows = (H + 2) * R
    M = (H - 1) * R + W

    # ---- VMEM budget, computed from the actual buffers (with headroom) ----
    io_block = 2 * (H * W * Cin * 4) + 2 * (H * W * Cout * 4)            # x/out, 2 bufs
    wgt = 2 * ((w1f.size + w2f.size + w3f.size) * 2
               + (b1.size + b2.size + b3.size) * 4)                      # 2 bufs each
    pad_bytes = pad_rows * P * 2                                         # bf16 scratch
    interm = ((H * W * P) * (4 + 2)        # h1 f32 + h1 bf16
              + 2 * (M * P * 4)            # conv2 accumulator / h2
              + M * Cout * (4 + 2))        # h3 f32 + bf16 staging
    est = int(1.25 * (io_block + wgt + pad_bytes + interm)) + (2 << 20)
    vmem_limit = max(est, 32 * 1024 * 1024)
    try:
        phys_vmem = int(pltpu.get_tpu_info().vmem_capacity_bytes)
    except Exception:
        phys_vmem = 64 * 1024 * 1024     # v7x per-TensorCore floor
    assert vmem_limit <= phys_vmem, (
        f"per-step VMEM estimate {vmem_limit} exceeds physical {phys_vmem}; "
        "TODO(synk): add a spatial-tile grid axis with halo for large H*W*C")

    flops = 2 * N * (H * W * Cin * P + M * 9 * P * P + M * P * Cout)
    bytes_accessed = (x.size * 4 + N * H * W * Cout * 4
                      + (w1f.size + w2f.size + w3f.size) * 2
                      + (b1.size + b2.size + b3.size) * 4)

    def full(a):
        nd = a.ndim
        return pl.BlockSpec(a.shape, lambda n, _nd=nd: (0,) * _nd)

    return pl.pallas_call(
        bottleneck_kernel,
        out_shape=jax.ShapeDtypeStruct((N, H, W, Cout), x.dtype),
        grid_spec=pltpu.PrefetchScalarGridSpec(
            num_scalar_prefetch=0,
            grid=(N,),
            in_specs=[
                pl.BlockSpec((1, H, W, Cin), lambda n: (n, 0, 0, 0)),
                full(w1f), full(b1), full(w2f), full(b2), full(w3f), full(b3),
            ],
            out_specs=pl.BlockSpec((1, H, W, Cout), lambda n: (n, 0, 0, 0)),
            scratch_shapes=[
                pltpu.VMEM((pad_rows, P), jnp.bfloat16),   # flat zero-padded h1
            ],
        ),
        compiler_params=pltpu.CompilerParams(
            dimension_semantics=("parallel",),
            vmem_limit_bytes=vmem_limit,
        ),
        cost_estimate=pl.CostEstimate(flops=flops, transcendentals=0,
                                      bytes_accessed=bytes_accessed),
    )(x, w1f, b1, w2f, b2, w3f, b3)


if __name__ == "__main__":
    N, H, W = 2, 8, 8
    planes = 32
    in_planes = 4 * planes      # downsample=None ⇒ in_planes == expansion * planes
    Cout = 4 * planes
    eps = 1e-5

    key = jax.random.PRNGKey(0)
    ks = jax.random.split(key, 16)

    x = jax.random.normal(ks[0], (N, H, W, in_planes), jnp.float32)

    w1 = jax.random.normal(ks[1], (in_planes, planes), jnp.float32) / jnp.sqrt(in_planes)
    w2 = jax.random.normal(ks[2], (9, planes, planes), jnp.float32) / jnp.sqrt(9.0 * planes)
    w3 = jax.random.normal(ks[3], (planes, Cout), jnp.float32) / jnp.sqrt(planes)

    def bn_params(kg, kb, km, kv, c):
        gamma = 1.0 + 0.1 * jax.random.normal(kg, (c,), jnp.float32)
        beta = 0.1 * jax.random.normal(kb, (c,), jnp.float32)
        mean = 0.1 * jax.random.normal(km, (c,), jnp.float32)
        var = 1.0 + 0.1 * jax.random.uniform(kv, (c,), jnp.float32)
        scale = gamma / jnp.sqrt(var + eps)
        bias = beta - mean * scale
        return scale, bias

    s1, b1 = bn_params(ks[4], ks[5], ks[6], ks[7], planes)
    s2, b2 = bn_params(ks[8], ks[9], ks[10], ks[11], planes)
    s3, b3 = bn_params(ks[12], ks[13], ks[14], ks[15], Cout)

    # Fold BN scales into conv weights (eval mode); store weights in bf16.
    w1f = (w1 * s1[None, :]).astype(jnp.bfloat16)              # (Cin, P)
    w2f = (w2 * s2[None, None, :]).astype(jnp.bfloat16)        # (9, P, P), tap = dy*3+dx
    w3f = (w3 * s3[None, :]).astype(jnp.bfloat16)              # (P, Cout)

    out = bottleneck_pallas(x, w1f, b1.reshape(1, -1), w2f,
                            b2.reshape(1, -1), w3f, b3.reshape(1, -1))
    out = jax.block_until_ready(out)

    # Pure-JAX reference (NHWC), same bf16-operand / f32-accumulation recipe.
    dn = ('NHWC', 'HWIO', 'NHWC')
    f32 = jnp.float32
    h = jax.lax.conv_general_dilated(
        x.astype(jnp.bfloat16), w1f.reshape(1, 1, in_planes, planes),
        (1, 1), 'VALID', dimension_numbers=dn, preferred_element_type=f32) + b1
    h = jax.lax.conv_general_dilated(
        h.astype(jnp.bfloat16), w2f.reshape(3, 3, planes, planes),
        (1, 1), 'SAME', dimension_numbers=dn, preferred_element_type=f32) + b2
    h = jax.lax.conv_general_dilated(
        h.astype(jnp.bfloat16), w3f.reshape(1, 1, planes, Cout),
        (1, 1), 'VALID', dimension_numbers=dn, preferred_element_type=f32) + b3
    ref = jnp.maximum(x + h, 0.0)

    err = float(jnp.max(jnp.abs(out - ref)))
    assert jnp.allclose(out, ref, atol=1e-2, rtol=1e-2), err
    print("KERNEL_OK")
</pallas_src>

<mosaic_0001>
module attributes {stable_mosaic.version = 11 : i64} {
  func.func @bottleneck_kernel(%arg0: i32, %arg1: memref<1x8x8x128xf32, #tpu.memory_space<vmem>>, %arg2: memref<128x32xbf16, #tpu.memory_space<vmem>>, %arg3: memref<1x32xf32, #tpu.memory_space<vmem>>, %arg4: memref<9x32x32xbf16, #tpu.memory_space<vmem>>, %arg5: memref<1x32xf32, #tpu.memory_space<vmem>>, %arg6: memref<32x128xbf16, #tpu.memory_space<vmem>>, %arg7: memref<1x128xf32, #tpu.memory_space<vmem>>, %arg8: memref<1x8x8x128xf32, #tpu.memory_space<vmem>>, %arg9: memref<160x32xbf16, #tpu.memory_space<vmem>>) attributes {dimension_semantics = [#tpu.dimension_semantics<parallel>], iteration_bounds = array<i64: 2>, scalar_prefetch = 0 : i64, scratch_operands = 1 : i64, tpu.core_type = #tpu.core_type<tc>, window_params = [{transform_indices = @transform_0, window_bounds = array<i64: 1, 8, 8, 128>}, {pipeline_mode = #tpu.pipeline_mode<synchronous>, transform_indices = @transform_1, window_bounds = array<i64: 128, 32>}, {pipeline_mode = #tpu.pipeline_mode<synchronous>, transform_indices = @transform_2, window_bounds = array<i64: 1, 32>}, {pipeline_mode = #tpu.pipeline_mode<synchronous>, transform_indices = @transform_3, window_bounds = array<i64: 9, 32, 32>}, {pipeline_mode = #tpu.pipeline_mode<synchronous>, transform_indices = @transform_4, window_bounds = array<i64: 1, 32>}, {pipeline_mode = #tpu.pipeline_mode<synchronous>, transform_indices = @transform_5, window_bounds = array<i64: 32, 128>}, {pipeline_mode = #tpu.pipeline_mode<synchronous>, transform_indices = @transform_6, window_bounds = array<i64: 1, 128>}, {transform_indices = @transform_7, window_bounds = array<i64: 1, 8, 8, 128>}]} {
    %c0 = arith.constant 0 : index
    %c0_0 = arith.constant 0 : index
    %c0_1 = arith.constant 0 : index
    %c0_2 = arith.constant 0 : index
    %0 = vector.load %arg1[%c0, %c0_0, %c0_1, %c0_2] : memref<1x8x8x128xf32, #tpu.memory_space<vmem>>, vector<1x8x8x128xf32>
    %1 = vector.shape_cast %0 : vector<1x8x8x128xf32> to vector<8x8x128xf32>
    %2 = vector.shape_cast %1 : vector<8x8x128xf32> to vector<64x128xf32>
    %3 = arith.truncf %2 : vector<64x128xf32> to vector<64x128xbf16>
    %c0_3 = arith.constant 0 : index
    %c0_4 = arith.constant 0 : index
    %4 = vector.load %arg2[%c0_3, %c0_4] : memref<128x32xbf16, #tpu.memory_space<vmem>>, vector<128x32xbf16>
    %cst = arith.constant dense<0.000000e+00> : vector<64x32xf32>
    %5 = tpu.matmul %3, %4, %cst {dimension_numbers = #tpu.dot_dimension_numbers<[1], [0], [0], [1], [0, 0, 1, 1], [], []>} : vector<64x128xbf16>, vector<128x32xbf16>, vector<64x32xf32> -> vector<64x32xf32>
    %c0_5 = arith.constant 0 : index
    %c0_6 = arith.constant 0 : index
    %6 = vector.load %arg3[%c0_5, %c0_6] : memref<1x32xf32, #tpu.memory_space<vmem>>, vector<1x32xf32>
    %7 = vector.broadcast %6 : vector<1x32xf32> to vector<64x32xf32>
    %8 = arith.addf %5, %7 : vector<64x32xf32>
    %9 = arith.truncf %8 : vector<64x32xf32> to vector<64x32xbf16>
    %cst_7 = arith.constant 0.000000e+00 : bf16
    %10 = vector.broadcast %cst_7 : bf16 to vector<160x32xbf16>
    %c0_8 = arith.constant 0 : index
    %c0_9 = arith.constant 0 : index
    %11 = vector.load %arg9[%c0_8, %c0_9] : memref<160x32xbf16, #tpu.memory_space<vmem>>, vector<160x32xbf16>
    tpu.vector_store %arg9[%c0_8, %c0_9], %10 {strides = array<i32>} : memref<160x32xbf16, #tpu.memory_space<vmem>>, vector<160x32xbf16>,
    %12 = vector.extract_strided_slice %9 {offsets = [0, 0], sizes = [8, 32], strides = [1, 1]} : vector<64x32xbf16> to vector<8x32xbf16>
    %c17 = arith.constant 17 : index
    %c0_10 = arith.constant 0 : index
    %13 = vector.load %arg9[%c17, %c0_10] : memref<160x32xbf16, #tpu.memory_space<vmem>>, vector<8x32xbf16>
    tpu.vector_store %arg9[%c17, %c0_10], %12 {strides = array<i32>} : memref<160x32xbf16, #tpu.memory_space<vmem>>, vector<8x32xbf16>,
    %14 = vector.extract_strided_slice %9 {offsets = [8, 0], sizes = [8, 32], strides = [1, 1]} : vector<64x32xbf16> to vector<8x32xbf16>
    %c33 = arith.constant 33 : index
    %c0_11 = arith.constant 0 : index
    %15 = vector.load %arg9[%c33, %c0_11] : memref<160x32xbf16, #tpu.memory_space<vmem>>, vector<8x32xbf16>
    tpu.vector_store %arg9[%c33, %c0_11], %14 {strides = array<i32>} : memref<160x32xbf16, #tpu.memory_space<vmem>>, vector<8x32xbf16>,
    %16 = vector.extract_strided_slice %9 {offsets = [16, 0], sizes = [8, 32], strides = [1, 1]} : vector<64x32xbf16> to vector<8x32xbf16>
    %c49 = arith.constant 49 : index
    %c0_12 = arith.constant 0 : index
    %17 = vector.load %arg9[%c49, %c0_12] : memref<160x32xbf16, #tpu.memory_space<vmem>>, vector<8x32xbf16>
    tpu.vector_store %arg9[%c49, %c0_12], %16 {strides = array<i32>} : memref<160x32xbf16, #tpu.memory_space<vmem>>, vector<8x32xbf16>,
    %18 = vector.extract_strided_slice %9 {offsets = [24, 0], sizes = [8, 32], strides = [1, 1]} : vector<64x32xbf16> to vector<8x32xbf16>
    %c65 = arith.constant 65 : index
    %c0_13 = arith.constant 0 : index
    %19 = vector.load %arg9[%c65, %c0_13] : memref<160x32xbf16, #tpu.memory_space<vmem>>, vector<8x32xbf16>
    tpu.vector_store %arg9[%c65, %c0_13], %18 {strides = array<i32>} : memref<160x32xbf16, #tpu.memory_space<vmem>>, vector<8x32xbf16>,
    %20 = vector.extract_strided_slice %9 {offsets = [32, 0], sizes = [8, 32], strides = [1, 1]} : vector<64x32xbf16> to vector<8x32xbf16>
    %c81 = arith.constant 81 : index
    %c0_14 = arith.constant 0 : index
    %21 = vector.load %arg9[%c81, %c0_14] : memref<160x32xbf16, #tpu.memory_space<vmem>>, vector<8x32xbf16>
    tpu.vector_store %arg9[%c81, %c0_14], %20 {strides = array<i32>} : memref<160x32xbf16, #tpu.memory_space<vmem>>, vector<8x32xbf16>,
    %22 = vector.extract_strided_slice %9 {offsets = [40, 0], sizes = [8, 32], strides = [1, 1]} : vector<64x32xbf16> to vector<8x32xbf16>
    %c97 = arith.constant 97 : index
    %c0_15 = arith.constant 0 : index
    %23 = vector.load %arg9[%c97, %c0_15] : memref<160x32xbf16, #tpu.memory_space<vmem>>, vector<8x32xbf16>
    tpu.vector_store %arg9[%c97, %c0_15], %22 {strides = array<i32>} : memref<160x32xbf16, #tpu.memory_space<vmem>>, vector<8x32xbf16>,
    %24 = vector.extract_strided_slice %9 {offsets = [48, 0], sizes = [8, 32], strides = [1, 1]} : vector<64x32xbf16> to vector<8x32xbf16>
    %c113 = arith.constant 113 : index
    %c0_16 = arith.constant 0 : index
    %25 = vector.load %arg9[%c113, %c0_16] : memref<160x32xbf16, #tpu.memory_space<vmem>>, vector<8x32xbf16>
    tpu.vector_store %arg9[%c113, %c0_16], %24 {strides = array<i32>} : memref<160x32xbf16, #tpu.memory_space<vmem>>, vector<8x32xbf16>,
    %26 = vector.extract_strided_slice %9 {offsets = [56, 0], sizes = [8, 32], strides = [1, 1]} : vector<64x32xbf16> to vector<8x32xbf16>
    %c129 = arith.constant 129 : index
    %c0_17 = arith.constant 0 : index
    %27 = vector.load %arg9[%c129, %c0_17] : memref<160x32xbf16, #tpu.memory_space<vmem>>, vector<8x32xbf16>
    tpu.vector_store %arg9[%c129, %c0_17], %26 {strides = array<i32>} : memref<160x32xbf16, #tpu.memory_space<vmem>>, vector<8x32xbf16>,
    %cst_18 = arith.constant 0.000000e+00 : f32
    %28 = vector.broadcast %cst_18 : f32 to vector<120x32xf32>
    %c0_19 = arith.constant 0 : index
    %c0_20 = arith.constant 0 : index
    %29 = vector.load %arg9[%c0_19, %c0_20] : memref<160x32xbf16, #tpu.memory_space<vmem>>, vector<120x32xbf16>
    %c0_21 = arith.constant 0 : index
    %c0_22 = arith.constant 0 : index
    %c0_23 = arith.constant 0 : index
    %30 = vector.load %arg4[%c0_21, %c0_22, %c0_23] : memref<9x32x32xbf16, #tpu.memory_space<vmem>>, vector<1x32x32xbf16>
    %31 = vector.shape_cast %30 : vector<1x32x32xbf16> to vector<32x32xbf16>
    %cst_24 = arith.constant dense<0.000000e+00> : vector<120x32xf32>
    %32 = tpu.matmul %29, %31, %cst_24 {dimension_numbers = #tpu.dot_dimension_numbers<[1], [0], [0], [1], [0, 0, 1, 1], [], []>} : vector<120x32xbf16>, vector<32x32xbf16>, vector<120x32xf32> -> vector<120x32xf32>
    %33 = arith.addf %28, %32 : vector<120x32xf32>
    %c1 = arith.constant 1 : index
    %c0_25 = arith.constant 0 : index
    %34 = vector.load %arg9[%c1, %c0_25] : memref<160x32xbf16, #tpu.memory_space<vmem>>, vector<120x32xbf16>
    %c1_26 = arith.constant 1 : index
    %c0_27 = arith.constant 0 : index
    %c0_28 = arith.constant 0 : index
    %35 = vector.load %arg4[%c1_26, %c0_27, %c0_28] : memref<9x32x32xbf16, #tpu.memory_space<vmem>>, vector<1x32x32xbf16>
    %36 = vector.shape_cast %35 : vector<1x32x32xbf16> to vector<32x32xbf16>
    %cst_29 = arith.constant dense<0.000000e+00> : vector<120x32xf32>
    %37 = tpu.matmul %34, %36, %cst_29 {dimension_numbers = #tpu.dot_dimension_numbers<[1], [0], [0], [1], [0, 0, 1, 1], [], []>} : vector<120x32xbf16>, vector<32x32xbf16>, vector<120x32xf32> -> vector<120x32xf32>
    %38 = arith.addf %33, %37 : vector<120x32xf32>
    %c2 = arith.constant 2 : index
    %c0_30 = arith.constant 0 : index
    %39 = vector.load %arg9[%c2, %c0_30] : memref<160x32xbf16, #tpu.memory_space<vmem>>, vector<120x32xbf16>
    %c2_31 = arith.constant 2 : index
    %c0_32 = arith.constant 0 : index
    %c0_33 = arith.constant 0 : index
    %40 = vector.load %arg4[%c2_31, %c0_32, %c0_33] : memref<9x32x32xbf16, #tpu.memory_space<vmem>>, vector<1x32x32xbf16>
    %41 = vector.shape_cast %40 : vector<1x32x32xbf16> to vector<32x32xbf16>
    %cst_34 = arith.constant dense<0.000000e+00> : vector<120x32xf32>
    %42 = tpu.matmul %39, %41, %cst_34 {dimension_numbers = #tpu.dot_dimension_numbers<[1], [0], [0], [1], [0, 0, 1, 1], [], []>} : vector<120x32xbf16>, vector<32x32xbf16>, vector<120x32xf32> -> vector<120x32xf32>
    %43 = arith.addf %38, %42 : vector<120x32xf32>
    %c16 = arith.constant 16 : index
    %c0_35 = arith.constant 0 : index
    %44 = vector.load %arg9[%c16, %c0_35] : memref<160x32xbf16, #tpu.memory_space<vmem>>, vector<120x32xbf16>
    %c3 = arith.constant 3 : index
    %c0_36 = arith.constant 0 : index
    %c0_37 = arith.constant 0 : index
    %45 = vector.load %arg4[%c3, %c0_36, %c0_37] : memref<9x32x32xbf16, #tpu.memory_space<vmem>>, vector<1x32x32xbf16>
    %46 = vector.shape_cast %45 : vector<1x32x32xbf16> to vector<32x32xbf16>
    %cst_38 = arith.constant dense<0.000000e+00> : vector<120x32xf32>
    %47 = tpu.matmul %44, %46, %cst_38 {dimension_numbers = #tpu.dot_dimension_numbers<[1], [0], [0], [1], [0, 0, 1, 1], [], []>} : vector<120x32xbf16>, vector<32x32xbf16>, vector<120x32xf32> -> vector<120x32xf32>
    %48 = arith.addf %43, %47 : vector<120x32xf32>
    %c17_39 = arith.constant 17 : index
    %c0_40 = arith.constant 0 : index
    %49 = vector.load %arg9[%c17_39, %c0_40] : memref<160x32xbf16, #tpu.memory_space<vmem>>, vector<120x32xbf16>
    %c4 = arith.constant 4 : index
    %c0_41 = arith.constant 0 : index
    %c0_42 = arith.constant 0 : index
    %50 = vector.load %arg4[%c4, %c0_41, %c0_42] : memref<9x32x32xbf16, #tpu.memory_space<vmem>>, vector<1x32x32xbf16>
    %51 = vector.shape_cast %50 : vector<1x32x32xbf16> to vector<32x32xbf16>
    %cst_43 = arith.constant dense<0.000000e+00> : vector<120x32xf32>
    %52 = tpu.matmul %49, %51, %cst_43 {dimension_numbers = #tpu.dot_dimension_numbers<[1], [0], [0], [1], [0, 0, 1, 1], [], []>} : vector<120x32xbf16>, vector<32x32xbf16>, vector<120x32xf32> -> vector<120x32xf32>
    %53 = arith.addf %48, %52 : vector<120x32xf32>
    %c18 = arith.constant 18 : index
    %c0_44 = arith.constant 0 : index
    %54 = vector.load %arg9[%c18, %c0_44] : memref<160x32xbf16, #tpu.memory_space<vmem>>, vector<120x32xbf16>
    %c5 = arith.constant 5 : index
    %c0_45 = arith.constant 0 : index
    %c0_46 = arith.constant 0 : index
    %55 = vector.load %arg4[%c5, %c0_45, %c0_46] : memref<9x32x32xbf16, #tpu.memory_space<vmem>>, vector<1x32x32xbf16>
    %56 = vector.shape_cast %55 : vector<1x32x32xbf16> to vector<32x32xbf16>
    %cst_47 = arith.constant dense<0.000000e+00> : vector<120x32xf32>
    %57 = tpu.matmul %54, %56, %cst_47 {dimension_numbers = #tpu.dot_dimension_numbers<[1], [0], [0], [1], [0, 0, 1, 1], [], []>} : vector<120x32xbf16>, vector<32x32xbf16>, vector<120x32xf32> -> vector<120x32xf32>
    %58 = arith.addf %53, %57 : vector<120x32xf32>
    %c32 = arith.constant 32 : index
    %c0_48 = arith.constant 0 : index
    %59 = vector.load %arg9[%c32, %c0_48] : memref<160x32xbf16, #tpu.memory_space<vmem>>, vector<120x32xbf16>
    %c6 = arith.constant 6 : index
    %c0_49 = arith.constant 0 : index
    %c0_50 = arith.constant 0 : index
    %60 = vector.load %arg4[%c6, %c0_49, %c0_50] : memref<9x32x32xbf16, #tpu.memory_space<vmem>>, vector<1x32x32xbf16>
    %61 = vector.shape_cast %60 : vector<1x32x32xbf16> to vector<32x32xbf16>
    %cst_51 = arith.constant dense<0.000000e+00> : vector<120x32xf32>
    %62 = tpu.matmul %59, %61, %cst_51 {dimension_numbers = #tpu.dot_dimension_numbers<[1], [0], [0], [1], [0, 0, 1, 1], [], []>} : vector<120x32xbf16>, vector<32x32xbf16>, vector<120x32xf32> -> vector<120x32xf32>
    %63 = arith.addf %58, %62 : vector<120x32xf32>
    %c33_52 = arith.constant 33 : index
    %c0_53 = arith.constant 0 : index
    %64 = vector.load %arg9[%c33_52, %c0_53] : memref<160x32xbf16, #tpu.memory_space<vmem>>, vector<120x32xbf16>
    %c7 = arith.constant 7 : index
    %c0_54 = arith.constant 0 : index
    %c0_55 = arith.constant 0 : index
    %65 = vector.load %arg4[%c7, %c0_54, %c0_55] : memref<9x32x32xbf16, #tpu.memory_space<vmem>>, vector<1x32x32xbf16>
    %66 = vector.shape_cast %65 : vector<1x32x32xbf16> to vector<32x32xbf16>
    %cst_56 = arith.constant dense<0.000000e+00> : vector<120x32xf32>
    %67 = tpu.matmul %64, %66, %cst_56 {dimension_numbers = #tpu.dot_dimension_numbers<[1], [0], [0], [1], [0, 0, 1, 1], [], []>} : vector<120x32xbf16>, vector<32x32xbf16>, vector<120x32xf32> -> vector<120x32xf32>
    %68 = arith.addf %63, %67 : vector<120x32xf32>
    %c34 = arith.constant 34 : index
    %c0_57 = arith.constant 0 : index
    %69 = vector.load %arg9[%c34, %c0_57] : memref<160x32xbf16, #tpu.memory_space<vmem>>, vector<120x32xbf16>
    %c8 = arith.constant 8 : index
    %c0_58 = arith.constant 0 : index
    %c0_59 = arith.constant 0 : index
    %70 = vector.load %arg4[%c8, %c0_58, %c0_59] : memref<9x32x32xbf16, #tpu.memory_space<vmem>>, vector<1x32x32xbf16>
    %71 = vector.shape_cast %70 : vector<1x32x32xbf16> to vector<32x32xbf16>
    %cst_60 = arith.constant dense<0.000000e+00> : vector<120x32xf32>
    %72 = tpu.matmul %69, %71, %cst_60 {dimension_numbers = #tpu.dot_dimension_numbers<[1], [0], [0], [1], [0, 0, 1, 1], [], []>} : vector<120x32xbf16>, vector<32x32xbf16>, vector<120x32xf32> -> vector<120x32xf32>
    %73 = arith.addf %68, %72 : vector<120x32xf32>
    %c0_61 = arith.constant 0 : index
    %c0_62 = arith.constant 0 : index
    %74 = vector.load %arg5[%c0_61, %c0_62] : memref<1x32xf32, #tpu.memory_space<vmem>>, vector<1x32xf32>
    %75 = vector.broadcast %74 : vector<1x32xf32> to vector<120x32xf32>
    %76 = arith.addf %73, %75 : vector<120x32xf32>
    %77 = arith.truncf %76 : vector<120x32xf32> to vector<120x32xbf16>
    %c0_63 = arith.constant 0 : index
    %c0_64 = arith.constant 0 : index
    %78 = vector.load %arg6[%c0_63, %c0_64] : memref<32x128xbf16, #tpu.memory_space<vmem>>, vector<32x128xbf16>
    %cst_65 = arith.constant dense<0.000000e+00> : vector<120x128xf32>
    %79 = tpu.matmul %77, %78, %cst_65 {dimension_numbers = #tpu.dot_dimension_numbers<[1], [0], [0], [1], [0, 0, 1, 1], [], []>} : vector<120x32xbf16>, vector<32x128xbf16>, vector<120x128xf32> -> vector<120x128xf32>
    %c0_66 = arith.constant 0 : index
    %c0_67 = arith.constant 0 : index
    %80 = vector.load %arg7[%c0_66, %c0_67] : memref<1x128xf32, #tpu.memory_space<vmem>>, vector<1x128xf32>
    %81 = vector.broadcast %80 : vector<1x128xf32> to vector<120x128xf32>
    %82 = arith.addf %79, %81 : vector<120x128xf32>
    %c0_68 = arith.constant 0 : index
    %c0_69 = arith.constant 0 : index
    %c0_70 = arith.constant 0 : index
    %c0_71 = arith.constant 0 : index
    %83 = vector.load %arg1[%c0_68, %c0_69, %c0_70, %c0_71] : memref<1x8x8x128xf32, #tpu.memory_space<vmem>>, vector<1x1x8x128xf32>
    %84 = vector.shape_cast %83 : vector<1x1x8x128xf32> to vector<8x128xf32>
    %85 = vector.extract_strided_slice %82 {offsets = [0, 0], sizes = [8, 128], strides = [1, 1]} : vector<120x128xf32> to vector<8x128xf32>
    %86 = arith.addf %84, %85 : vector<8x128xf32>
    %cst_72 = arith.constant 0.000000e+00 : f32
    %87 = vector.broadcast %cst_72 : f32 to vector<8x128xf32>
    %88 = arith.maximumf %86, %87 : vector<8x128xf32>
    %c0_73 = arith.constant 0 : index
    %c0_74 = arith.constant 0 : index
    %c0_75 = arith.constant 0 : index
    %c0_76 = arith.constant 0 : index
    %89 = vector.load %arg8[%c0_73, %c0_74, %c0_75, %c0_76] : memref<1x8x8x128xf32, #tpu.memory_space<vmem>>, vector<1x1x8x128xf32>
    %90 = vector.shape_cast %89 : vector<1x1x8x128xf32> to vector<8x128xf32>
    %91 = vector.shape_cast %88 : vector<8x128xf32> to vector<1x1x8x128xf32>
    tpu.vector_store %arg8[%c0_73, %c0_74, %c0_75, %c0_76], %91 {strides = array<i32>} : memref<1x8x8x128xf32, #tpu.memory_space<vmem>>, vector<1x1x8x128xf32>,
    %c0_77 = arith.constant 0 : index
    %c1_78 = arith.constant 1 : index
    %c0_79 = arith.constant 0 : index
    %c0_80 = arith.constant 0 : index
    %92 = vector.load %arg1[%c0_77, %c1_78, %c0_79, %c0_80] : memref<1x8x8x128xf32, #tpu.memory_space<vmem>>, vector<1x1x8x128xf32>
    %93 = vector.shape_cast %92 : vector<1x1x8x128xf32> to vector<8x128xf32>
    %94 = vector.extract_strided_slice %82 {offsets = [16, 0], sizes = [8, 128], strides = [1, 1]} : vector<120x128xf32> to vector<8x128xf32>
    %95 = arith.addf %93, %94 : vector<8x128xf32>
    %cst_81 = arith.constant 0.000000e+00 : f32
    %96 = vector.broadcast %cst_81 : f32 to vector<8x128xf32>
    %97 = arith.maximumf %95, %96 : vector<8x128xf32>
    %c0_82 = arith.constant 0 : index
    %c1_83 = arith.constant 1 : index
    %c0_84 = arith.constant 0 : index
    %c0_85 = arith.constant 0 : index
    %98 = vector.load %arg8[%c0_82, %c1_83, %c0_84, %c0_85] : memref<1x8x8x128xf32, #tpu.memory_space<vmem>>, vector<1x1x8x128xf32>
    %99 = vector.shape_cast %98 : vector<1x1x8x128xf32> to vector<8x128xf32>
    %100 = vector.shape_cast %97 : vector<8x128xf32> to vector<1x1x8x128xf32>
    tpu.vector_store %arg8[%c0_82, %c1_83, %c0_84, %c0_85], %100 {strides = array<i32>} : memref<1x8x8x128xf32, #tpu.memory_space<vmem>>, vector<1x1x8x128xf32>,
    %c0_86 = arith.constant 0 : index
    %c2_87 = arith.constant 2 : index
    %c0_88 = arith.constant 0 : index
    %c0_89 = arith.constant 0 : index
    %101 = vector.load %arg1[%c0_86, %c2_87, %c0_88, %c0_89] : memref<1x8x8x128xf32, #tpu.memory_space<vmem>>, vector<1x1x8x128xf32>
    %102 = vector.shape_cast %101 : vector<1x1x8x128xf32> to vector<8x128xf32>
    %103 = vector.extract_strided_slice %82 {offsets = [32, 0], sizes = [8, 128], strides = [1, 1]} : vector<120x128xf32> to vector<8x128xf32>
    %104 = arith.addf %102, %103 : vector<8x128xf32>
    %cst_90 = arith.constant 0.000000e+00 : f32
    %105 = vector.broadcast %cst_90 : f32 to vector<8x128xf32>
    %106 = arith.maximumf %104, %105 : vector<8x128xf32>
    %c0_91 = arith.constant 0 : index
    %c2_92 = arith.constant 2 : index
    %c0_93 = arith.constant 0 : index
    %c0_94 = arith.constant 0 : index
    %107 = vector.load %arg8[%c0_91, %c2_92, %c0_93, %c0_94] : memref<1x8x8x128xf32, #tpu.memory_space<vmem>>, vector<1x1x8x128xf32>
    %108 = vector.shape_cast %107 : vector<1x1x8x128xf32> to vector<8x128xf32>
    %109 = vector.shape_cast %106 : vector<8x128xf32> to vector<1x1x8x128xf32>
    tpu.vector_store %arg8[%c0_91, %c2_92, %c0_93, %c0_94], %109 {strides = array<i32>} : memref<1x8x8x128xf32, #tpu.memory_space<vmem>>, vector<1x1x8x128xf32>,
    %c0_95 = arith.constant 0 : index
    %c3_96 = arith.constant 3 : index
    %c0_97 = arith.constant 0 : index
    %c0_98 = arith.constant 0 : index
    %110 = vector.load %arg1[%c0_95, %c3_96, %c0_97, %c0_98] : memref<1x8x8x128xf32, #tpu.memory_space<vmem>>, vector<1x1x8x128xf32>
    %111 = vector.shape_cast %110 : vector<1x1x8x128xf32> to vector<8x128xf32>
    %112 = vector.extract_strided_slice %82 {offsets = [48, 0], sizes = [8, 128], strides = [1, 1]} : vector<120x128xf32> to vector<8x128xf32>
    %113 = arith.addf %111, %112 : vector<8x128xf32>
    %cst_99 = arith.constant 0.000000e+00 : f32
    %114 = vector.broadcast %cst_99 : f32 to vector<8x128xf32>
    %115 = arith.maximumf %113, %114 : vector<8x128xf32>
    %c0_100 = arith.constant 0 : index
    %c3_101 = arith.constant 3 : index
    %c0_102 = arith.constant 0 : index
    %c0_103 = arith.constant 0 : index
    %116 = vector.load %arg8[%c0_100, %c3_101, %c0_102, %c0_103] : memref<1x8x8x128xf32, #tpu.memory_space<vmem>>, vector<1x1x8x128xf32>
    %117 = vector.shape_cast %116 : vector<1x1x8x128xf32> to vector<8x128xf32>
    %118 = vector.shape_cast %115 : vector<8x128xf32> to vector<1x1x8x128xf32>
    tpu.vector_store %arg8[%c0_100, %c3_101, %c0_102, %c0_103], %118 {strides = array<i32>} : memref<1x8x8x128xf32, #tpu.memory_space<vmem>>, vector<1x1x8x128xf32>,
    %c0_104 = arith.constant 0 : index
    %c4_105 = arith.constant 4 : index
    %c0_106 = arith.constant 0 : index
    %c0_107 = arith.constant 0 : index
    %119 = vector.load %arg1[%c0_104, %c4_105, %c0_106, %c0_107] : memref<1x8x8x128xf32, #tpu.memory_space<vmem>>, vector<1x1x8x128xf32>
    %120 = vector.shape_cast %119 : vector<1x1x8x128xf32> to vector<8x128xf32>
    %121 = vector.extract_strided_slice %82 {offsets = [64, 0], sizes = [8, 128], strides = [1, 1]} : vector<120x128xf32> to vector<8x128xf32>
    %122 = arith.addf %120, %121 : vector<8x128xf32>
    %cst_108 = arith.constant 0.000000e+00 : f32
    %123 = vector.broadcast %cst_108 : f32 to vector<8x128xf32>
    %124 = arith.maximumf %122, %123 : vector<8x128xf32>
    %c0_109 = arith.constant 0 : index
    %c4_110 = arith.constant 4 : index
    %c0_111 = arith.constant 0 : index
    %c0_112 = arith.constant 0 : index
    %125 = vector.load %arg8[%c0_109, %c4_110, %c0_111, %c0_112] : memref<1x8x8x128xf32, #tpu.memory_space<vmem>>, vector<1x1x8x128xf32>
    %126 = vector.shape_cast %125 : vector<1x1x8x128xf32> to vector<8x128xf32>
    %127 = vector.shape_cast %124 : vector<8x128xf32> to vector<1x1x8x128xf32>
    tpu.vector_store %arg8[%c0_109, %c4_110, %c0_111, %c0_112], %127 {strides = array<i32>} : memref<1x8x8x128xf32, #tpu.memory_space<vmem>>, vector<1x1x8x128xf32>,
    %c0_113 = arith.constant 0 : index
    %c5_114 = arith.constant 5 : index
    %c0_115 = arith.constant 0 : index
    %c0_116 = arith.constant 0 : index
    %128 = vector.load %arg1[%c0_113, %c5_114, %c0_115, %c0_116] : memref<1x8x8x128xf32, #tpu.memory_space<vmem>>, vector<1x1x8x128xf32>
    %129 = vector.shape_cast %128 : vector<1x1x8x128xf32> to vector<8x128xf32>
    %130 = vector.extract_strided_slice %82 {offsets = [80, 0], sizes = [8, 128], strides = [1, 1]} : vector<120x128xf32> to vector<8x128xf32>
    %131 = arith.addf %129, %130 : vector<8x128xf32>
    %cst_117 = arith.constant 0.000000e+00 : f32
    %132 = vector.broadcast %cst_117 : f32 to vector<8x128xf32>
    %133 = arith.maximumf %131, %132 : vector<8x128xf32>
    %c0_118 = arith.constant 0 : index
    %c5_119 = arith.constant 5 : index
    %c0_120 = arith.constant 0 : index
    %c0_121 = arith.constant 0 : index
    %134 = vector.load %arg8[%c0_118, %c5_119, %c0_120, %c0_121] : memref<1x8x8x128xf32, #tpu.memory_space<vmem>>, vector<1x1x8x128xf32>
    %135 = vector.shape_cast %134 : vector<1x1x8x128xf32> to vector<8x128xf32>
    %136 = vector.shape_cast %133 : vector<8x128xf32> to vector<1x1x8x128xf32>
    tpu.vector_store %arg8[%c0_118, %c5_119, %c0_120, %c0_121], %136 {strides = array<i32>} : memref<1x8x8x128xf32, #tpu.memory_space<vmem>>, vector<1x1x8x128xf32>,
    %c0_122 = arith.constant 0 : index
    %c6_123 = arith.constant 6 : index
    %c0_124 = arith.constant 0 : index
    %c0_125 = arith.constant 0 : index
    %137 = vector.load %arg1[%c0_122, %c6_123, %c0_124, %c0_125] : memref<1x8x8x128xf32, #tpu.memory_space<vmem>>, vector<1x1x8x128xf32>
    %138 = vector.shape_cast %137 : vector<1x1x8x128xf32> to vector<8x128xf32>
    %139 = vector.extract_strided_slice %82 {offsets = [96, 0], sizes = [8, 128], strides = [1, 1]} : vector<120x128xf32> to vector<8x128xf32>
    %140 = arith.addf %138, %139 : vector<8x128xf32>
    %cst_126 = arith.constant 0.000000e+00 : f32
    %141 = vector.broadcast %cst_126 : f32 to vector<8x128xf32>
    %142 = arith.maximumf %140, %141 : vector<8x128xf32>
    %c0_127 = arith.constant 0 : index
    %c6_128 = arith.constant 6 : index
    %c0_129 = arith.constant 0 : index
    %c0_130 = arith.constant 0 : index
    %143 = vector.load %arg8[%c0_127, %c6_128, %c0_129, %c0_130] : memref<1x8x8x128xf32, #tpu.memory_space<vmem>>, vector<1x1x8x128xf32>
    %144 = vector.shape_cast %143 : vector<1x1x8x128xf32> to vector<8x128xf32>
    %145 = vector.shape_cast %142 : vector<8x128xf32> to vector<1x1x8x128xf32>
    tpu.vector_store %arg8[%c0_127, %c6_128, %c0_129, %c0_130], %145 {strides = array<i32>} : memref<1x8x8x128xf32, #tpu.memory_space<vmem>>, vector<1x1x8x128xf32>,
    %c0_131 = arith.constant 0 : index
    %c7_132 = arith.constant 7 : index
    %c0_133 = arith.constant 0 : index
    %c0_134 = arith.constant 0 : index
    %146 = vector.load %arg1[%c0_131, %c7_132, %c0_133, %c0_134] : memref<1x8x8x128xf32, #tpu.memory_space<vmem>>, vector<1x1x8x128xf32>
    %147 = vector.shape_cast %146 : vector<1x1x8x128xf32> to vector<8x128xf32>
    %148 = vector.extract_strided_slice %82 {offsets = [112, 0], sizes = [8, 128], strides = [1, 1]} : vector<120x128xf32> to vector<8x128xf32>
    %149 = arith.addf %147, %148 : vector<8x128xf32>
    %cst_135 = arith.constant 0.000000e+00 : f32
    %150 = vector.broadcast %cst_135 : f32 to vector<8x128xf32>
    %151 = arith.maximumf %149, %150 : vector<8x128xf32>
    %c0_136 = arith.constant 0 : index
    %c7_137 = arith.constant 7 : index
    %c0_138 = arith.constant 0 : index
    %c0_139 = arith.constant 0 : index
    %152 = vector.load %arg8[%c0_136, %c7_137, %c0_138, %c0_139] : memref<1x8x8x128xf32, #tpu.memory_space<vmem>>, vector<1x1x8x128xf32>
    %153 = vector.shape_cast %152 : vector<1x1x8x128xf32> to vector<8x128xf32>
    %154 = vector.shape_cast %151 : vector<8x128xf32> to vector<1x1x8x128xf32>
    tpu.vector_store %arg8[%c0_136, %c7_137, %c0_138, %c0_139], %154 {strides = array<i32>} : memref<1x8x8x128xf32, #tpu.memory_space<vmem>>, vector<1x1x8x128xf32>,
    return
  }
  func.func @transform_0(%arg0: i32) -> (i32, i32, i32, i32) {
    %c0_i32 = arith.constant 0 : i32
    %c0_i32_0 = arith.constant 0 : i32
    %c0_i32_1 = arith.constant 0 : i32
    %c0_i32_2 = arith.constant 0 : i32
    return %arg0, %c0_i32, %c0_i32_0, %c0_i32_1 : i32, i32, i32, i32
  }
  func.func @transform_1(%arg0: i32) -> (i32, i32) {
    %c0_i32 = arith.constant 0 : i32
    %c0_i32_0 = arith.constant 0 : i32
    %c0_i32_1 = arith.constant 0 : i32
    return %c0_i32, %c0_i32_0 : i32, i32
  }
  func.func @transform_2(%arg0: i32) -> (i32, i32) {
    %c0_i32 = arith.constant 0 : i32
    %c0_i32_0 = arith.constant 0 : i32
    %c0_i32_1 = arith.constant 0 : i32
    return %c0_i32, %c0_i32_0 : i32, i32
  }
  func.func @transform_3(%arg0: i32) -> (i32, i32, i32) {
    %c0_i32 = arith.constant 0 : i32
    %c0_i32_0 = arith.constant 0 : i32
    %c0_i32_1 = arith.constant 0 : i32
    %c0_i32_2 = arith.constant 0 : i32
    return %c0_i32, %c0_i32_0, %c0_i32_1 : i32, i32, i32
  }
  func.func @transform_4(%arg0: i32) -> (i32, i32) {
    %c0_i32 = arith.constant 0 : i32
    %c0_i32_0 = arith.constant 0 : i32
    %c0_i32_1 = arith.constant 0 : i32
    return %c0_i32, %c0_i32_0 : i32, i32
  }
  func.func @transform_5(%arg0: i32) -> (i32, i32) {
    %c0_i32 = arith.constant 0 : i32
    %c0_i32_0 = arith.constant 0 : i32
    %c0_i32_1 = arith.constant 0 : i32
    return %c0_i32, %c0_i32_0 : i32, i32
  }
  func.func @transform_6(%arg0: i32) -> (i32, i32) {
    %c0_i32 = arith.constant 0 : i32
    %c0_i32_0 = arith.constant 0 : i32
    %c0_i32_1 = arith.constant 0 : i32
    return %c0_i32, %c0_i32_0 : i32, i32
  }
  func.func @transform_7(%arg0: i32) -> (i32, i32, i32, i32) {
    %c0_i32 = arith.constant 0 : i32
    %c0_i32_0 = arith.constant 0 : i32
    %c0_i32_1 = arith.constant 0 : i32
    %c0_i32_2 = arith.constant 0 : i32
    return %arg0, %c0_i32, %c0_i32_0, %c0_i32_1 : i32, i32, i32, i32
  }
}

</mosaic_0001>

<bundles_post_ra>
// kernel: tpu_custom_call.1
= control target key start
LH: loop header
LB: loop body
LE: loop exit
PB: predicated region body
PF: predicated region fallthrough
CT: control target
= control target key end

     0   :  { %s4359_s0 = inlined_call_operand.hbm [shape: f32[2,8,8,128], index: 0, kind: input, shape index: {}]   ;;  %s4360_s1 = inlined_call_operand.vmem [shape: bf16[128,32], index: 1, kind: input, shape index: {}]   ;;  %s4361_s2 = inlined_call_operand.vmem [shape: f32[1,32], index: 2, kind: input, shape index: {}]   ;;  %s4362_s3 = inlined_call_operand.hbm [shape: bf16[9,32,32], index: 3, kind: input, shape index: {}]   ;;  %s4363_s4 = inlined_call_operand.vmem [shape: f32[1,32], index: 4, kind: input, shape index: {}]   ;;  %s4364_s5 = inlined_call_operand.vmem [shape: bf16[32,128], index: 5, kind: input, shape index: {}]   ;;  %s4365_s6 = inlined_call_operand.vmem [shape: f32[1,128], index: 6, kind: input, shape index: {}]   ;;  %s4366_s7 = inlined_call_operand.hbm [shape: f32[2,8,8,128], index: 7, kind: output, shape index: {}]  }
   0x1   :  { %4371 = sst [smem:[#allocation13_spill]] %s4362_s3 }
   0x2   :  { %12 = vsyncpa [#allocation4], 0 }
   0x3   :  { %14 = vsyncpa [#allocation4 + $0x1], 0 }
   0x4   :  { %15 = vsyncpa [#allocation7], 0 }
   0x5   :  { %16 = vsyncpa [#allocation5], 0 }
   0x6   :  { %18 = vsyncpa [#allocation5 + $0x1], 0  ;;  %s3656_s24 = smov 0   ;;  %s3658_s25 = smov 0  }
   0x7   :  { %s3660_s26 = smov 0   ;;  %s3662_s27 = smov 0  }
   0x8 LB: > { %s3677_s28 = sadd.s32 4294967295, %s3604_s27   ;;  %s2803_s29 = sadd.s32 4294967294, %s3604_s27   ;;  %s3604_s27 = sphi %s3662_s27, %s4396_s27   ;;  %s3600_s26 = sphi %s3660_s26, %s4395_s26   ;;  %s3596_s25 = sphi %s3658_s25, %s4394_s25   ;;  %s3592_s24 = sphi %s3656_s24, %s4393_s24  }
   0x9   : > { %p44_p0 = scmp.ne.s32.totalorder %s3596_s25, %s3592_s24  ;;  %p4367_p1 = scmp.eq.s32.totalorder %s3677_s28, 0 }
   0xa   : > { %p200_p3 = scmp.eq.s32.totalorder %s2803_s29, 1  ;;  %p2804_p5 = scmp.ge.s32.totalorder %s3604_s27, 1 }
   0xb   : > { %p3686_p4 = por %p4367_p1, %p44_p0  ;;  %p207_p7 = scmp.lt.s32.totalorder %s3604_s27, 3 }
   0xc   : > { %p3691_p6 = por %p200_p3, %p44_p0  ;;  %s3606_s10 = smov [#allocation6]  }
   0xd   : > { %s4372_s30 = scalar_select %p3686_p4, 1, 0 }
   0xe   : > { %s4373_s8 = scalar_select %p3691_p6, 1, 0 }
   0xf   : > { %p3696_p8 = pnand %p2804_p5, %p207_p7  ;;  %s225_s11 = sshll.u32 %s3606_s10, 4  ;;  %s226_s11 = int_to_ptr.vmem [resolvable:$true] %s225_s11 }
  0x10   : > { %s3710_s13 = sadd.s32 1, %s3604_s27   ;;  %s31_s14 = sadd.s32 1, %s3600_s26 }
  0x11   : > { %s4374_s9 = scalar_select %p3696_p8, 1, 0 }
  0x12   : > { %p3354_p9 = pneg %p3696_p8  ;;  %s28_s15 = ssub.s32 %s3604_s27, %s3710_s13 }
  0x13   : > { %s3493_s16 = scalar_lea.vmem %s226_s11, 2304  ;;  %p3501_p5 = scmp.lt.s32.totalorder %s226_s11, %s226_s11 }
  0x14   : > { %p3705_p11 = pnand %p3354_p9, %p4367_p1  ;;  %p3494_p13 = scmp.ne.s32.totalorder %s226_s11, %s3493_s16 }
  0x15   : > { %p3502_p7 = scmp.lt.s32.totalorder %s3493_s16, %s3493_s16 }
  0x16   : > { %p3484_p12 = pneg %p3705_p11 }
  0x17   : > { %p3503_p10 = por %p3502_p7, %p3501_p5 }
  0x18   : > { %p3496_p0 = pnand %p3494_p13, %p3484_p12 }
  0x1a   : > { %p3497_p3 = pneg %p3496_p0 }
  0x1c   : > { %p3504_p2 = pnand %p3503_p10, %p3497_p3 }
  0x1e   : > { %3507 = shalt.err (!%p3504_p2)
}
  0x1f   : > { %s3607_s17 = smov 64   ;;  %s3608_s18 = smov 4  }
  0x20   : > { %s4376_s3 = sld [smem:[#allocation13_spill]]  ;;  %p29_p9 = scmp.eq.s32.totalorder %s28_s15, 0 }
  0x21   : > { %p38_p12 = scmp.ne.s32.totalorder %s3600_s26, %s3596_s25  ;;  %p39_p10 = scmp.eq.s32.totalorder %s3604_s27, 0 }
  0x22   : > { %p3367_p2 = scmp.lt.s32.totalorder %s3604_s27, 2  ;;  %p4377_p0 = scmp.eq.s32.totalorder %s3677_s28, 1 }
  0x23   : > { %s3727_s21 = scalar_select %p29_p9, %s3600_s26, %s31_s14  }
  0x24   : > { %p40_p13 = por %p39_p10, %p38_p12  ;;  %p3731_p3 = por %p4377_p0, %p38_p12 }
  0x25   : > { %s248_s23 = sand.u32 1, %s3600_s26   ;;  %s2996_s29 = sshll.u32 %s3604_s27, 10 }
  0x26   : > { %3357 = dma.hbm_to_vmem [thread:$0]  (!%p3705_p11), %s4376_s3, 2304, %s226_s11, [#allocation7], %s3607_s17, %s3607_s17, %s3608_s18  }
  0x27   : > { %s4378_s22 = scalar_select %p3731_p3, 1, 0 }
  0x28   : > { %s2807_s10 = sshll.u32 %s248_s23, 6  ;;  %s3740_s19 = scalar_lea.hbm %s4359_s0, %s2996_s29 }
  0x29   : > { %s252_s11 = scalar_lea.vmem [#allocation3], %s2807_s10  ;;  %p3742_p11 = pnand %p3367_p2, %p40_p13 }
  0x2a   : > { %s259_s14 = sshll.u32 %s252_s11, 4  ;;  %s3748_s17 = scalar_lea.sflag [#allocation4], %s248_s23  ;;  %s3746_s14 = int_to_ptr.vmem [resolvable:$true] %s259_s14 }
  0x2b   : > { %s3508_s18 = scalar_lea.hbm %s3740_s19, 1024  ;;  %p3510_p7 = pneg %p3742_p11 }
  0x2c   : > { %p3509_p5 = scmp.ne.s32.totalorder %s3740_s19, %s3508_s18  ;;  %s3513_s10 = scalar_lea.hbm %s4359_s0, 2048 }
  0x2d   : > { %p3514_p10 = scmp.lt.s32.totalorder %s3740_s19, %s4359_s0  ;;  %p3515_p2 = scmp.lt.s32.totalorder %s3513_s10, %s3508_s18 }
  0x2e   : > { %p3511_p9 = pnand %p3510_p7, %p3509_p5 }
  0x2f   : > { %p3516_p13 = por %p3515_p2, %p3514_p10 }
  0x30   : > { %p3512_p12 = pneg %p3511_p9 }
  0x32   : > { %p3517_p0 = pnand %p3516_p13, %p3512_p12 }
  0x34   : > { %3520 = shalt.err (!%p3517_p0)
}
  0x35   : > { %s3521_s23 = scalar_lea.vmem %s3746_s14, 1024  ;;  %s3609_s11 = smov [#allocation3]  }
  0x36   : > { %p3522_p1 = scmp.ne.s32.totalorder %s3746_s14, %s3521_s23  ;;  %s3526_s3 = sshll.u32 %s3609_s11, 4  ;;  %s3527_s3 = int_to_ptr.vmem [resolvable:$false] %s3526_s3 }
  0x37   : > { %s3528_s20 = scalar_lea.vmem %s3527_s3, 2048  ;;  %p3529_p9 = scmp.lt.s32.totalorder %s3746_s14, %s3527_s3 }
  0x38   : > { %p3524_p6 = pnand %p3522_p1, %p3510_p7  ;;  %p3530_p3 = scmp.lt.s32.totalorder %s3528_s20, %s3521_s23 }
  0x3a   : > { %p3525_p5 = pneg %p3524_p6  ;;  %p3531_p4 = por %p3530_p3, %p3529_p9 }
  0x3c   : > { %p3532_p8 = pnand %p3531_p4, %p3525_p5 }
  0x3e   : > { %3535 = shalt.err (!%p3532_p8)
}
  0x3f   : > { %s3610_s18 = smov 128   ;;  %s3611_s29 = smov 8  }
  0x40   : > { %3361 = dma.hbm_to_vmem [thread:$0]  (!%p3742_p11), %s3740_s19, 1024, %s3746_s14, %s3748_s17, %s3610_s18, %s3610_s18, %s3611_s29  }
  0x41   : > { %p4380_p1 = scmp.ne.s32.totalorder %s4374_s9, 0 }
  0x43   : > { %271 = sbr.rel (%p4380_p1) target bundleno = 906 (0x38a), region = 48 }
  0x48   : > { %s3772_s10 = sand.u32 1, %s3596_s25   ;;  %p4381_p4 = scmp.ne.s32.totalorder %s4372_s30, 0 }
  0x49   : > { %s2811_s3 = sshll.u32 %s3772_s10, 6  ;;  %s274_s12 = scalar_lea.sflag [#allocation4], %s3772_s10 }
  0x4a   : > { %s3778_s16 = scalar_lea.vmem [#allocation3], %s2811_s3 }
  0x4b   : > { %3579 = dma.done.wait (%p4381_p4), %s274_s12, 1024  }
  0x4c   : > { %3581 = vsyncadd (%p4381_p4), %s274_s12, 4294966272  ;;  %p4382_p6 = scmp.eq.s32.totalorder %s3677_s28, 0 }
  0x4e   : > { %3583 = dma.done.wait (%p4382_p6), [#allocation7], 2304   ;;  %p4383_p8 = pmov %p4382_p6 }
  0x4f   : > { %v3410_v0 = vld [vmem:[%s4360_s1 + $0x38] sm:$0xff]   ;;  %v3411_v1 = vld [vmem:[%s4360_s1 + $0x30] sm:$0xff]   ;;  %v3412_v2 = vld [vmem:[%s4360_s1 + $0x28] sm:$0xff]   ;;  %vm465_vm0 = vcmask 257024   ;;  %v3612_v20 = vmov 0   ;;  %vm505_vm2 = vcmask 253952  }
  0x50   : > { %3585 = vsyncadd (%p4383_p8), [#allocation7], 4294964992  ;;  %3118 = vmatprep.subr.bf16.mxu0 %v3410_v0  ;;  %v3413_v3 = vld [vmem:[%s4360_s1 + $0x20] sm:$0xff]   ;;  %v313_v4 = vld [vmem:[%s3778_s16] sm:$0xff]  ;;  %472 = vst.msk [vmem:[#allocation2 + $0x18] sm:$0xf] %vm465_vm0, %v3612_v20 }
  0x51   : > { %3119 = vmatpush3.bf16.msra.mxu0 %v3410_v0  ;;  %v314_v5 = vld [vmem:[%s3778_s16 + $0x8] sm:$0xff]  ;;  %v3415_v8 = vld [vmem:[%s4360_s1 + $0x10] sm:$0xff]   ;;  %v3416_v9 = vld [vmem:[%s4360_s1 + $0x8] sm:$0xff]   ;;  %473 = vst.msk [vmem:[#allocation2 + $0x1c] sm:$0xf] %vm465_vm0, %v3612_v20  ;;  %vm781_vm7 = vcmask 261120  }
  0x52   : > { %3120 = vmatprep.subr.bf16.mxu0 %v3411_v1  ;;  %v321_v6 = vpack.c.bf16 %v314_v5, %v313_v4  ;;  %v3414_v7 = vld [vmem:[%s4360_s1 + $0x18] sm:$0xff]   ;;  %v3417_v10 = vld [vmem:[%s4360_s1] sm:$0xff]   ;;  %v316_v12 = vld [vmem:[%s3778_s16 + $0x18] sm:$0xff]  ;;  %466 = vst.msk [vmem:[#allocation2] sm:$0xf] %vm465_vm0, %v3612_v20  ;;  %vm1037_vm8 = vcmask 1046528  }
  0x53   : > { %v315_v11 = vld [vmem:[%s3778_s16 + $0x10] sm:$0xff]  ;;  %v317_v13 = vld [vmem:[%s3778_s16 + $0x20] sm:$0xff]  ;;  %v318_v14 = vld [vmem:[%s3778_s16 + $0x28] sm:$0xff]  ;;  %467 = vst.msk [vmem:[#allocation2 + $0x4] sm:$0xf] %vm465_vm0, %v3612_v20  ;;  %s4293_s14 = scalar_lea.vmem [#allocation8], %s2811_s3 }
  0x54   : > { %3134 = vmatprep.mubr.bf16.mxu0 %v321_v6  ;;  %v322_v15 = vpack.c.bf16 %v316_v12, %v315_v11  ;;  %v323_v16 = vpack.c.bf16 %v318_v14, %v317_v13  ;;  %v319_v17 = vld [vmem:[%s3778_s16 + $0x30] sm:$0xff]  ;;  %v320_v18 = vld [vmem:[%s3778_s16 + $0x38] sm:$0xff]  ;;  %468 = vst.msk [vmem:[#allocation2 + $0x8] sm:$0xf] %vm465_vm0, %v3612_v20  ;;  %469 = vst.msk [vmem:[#allocation2 + $0xc] sm:$0xf] %vm465_vm0, %v3612_v20 }
  0x55   : > { %3121 = vmatpush3.bf16.msra.mxu0 %v3411_v1  ;;  %v324_v19 = vpack.c.bf16 %v320_v18, %v319_v17  ;;  %470 = vst.msk [vmem:[#allocation2 + $0x10] sm:$0xf] %vm465_vm0, %v3612_v20  ;;  %471 = vst.msk [vmem:[#allocation2 + $0x14] sm:$0xf] %vm465_vm0, %v3612_v20  ;;  %v3418_v21 = vld [vmem:[#allocation6 + $0x18] sm:$0xff]   ;;  %v3419_v22 = vld [vmem:[#allocation6 + $0x10] sm:$0xff]  }
  0x56   : > { %3122 = vmatprep.subr.bf16.mxu0 %v3412_v2  ;;  %474 = vst.msk [vmem:[#allocation2 + $0x20] sm:$0xf] %vm465_vm0, %v3612_v20  ;;  %475 = vst.msk [vmem:[#allocation2 + $0x24] sm:$0xf] %vm465_vm0, %v3612_v20  ;;  %3342 = vmatprep.subr.bf16.mxu1 %v3418_v21  ;;  %v3840_v23 = vld [vmem:[#allocation6 + $0x28] sm:$0xff]   ;;  %s2720_s3 = sshll.u32 %s4293_s14, 4  ;;  %s4309_s3 = int_to_ptr.vmem [resolvable:$true] %s2720_s3 }
  0x57   : > { %476 = vst.msk [vmem:[#allocation2 + $0x28] sm:$0xf] %vm465_vm0, %v3612_v20  ;;  %477 = vst.msk [vmem:[#allocation2 + $0x2c] sm:$0xf] %vm465_vm0, %v3612_v20  ;;  %3344 = vmatpush3.bf16.msra.mxu1 %v3418_v21  ;;  %v3843_v24 = vld [vmem:[#allocation6 + $0x8] sm:$0xff]   ;;  %s3005_s15 = sshll.u32 %s3677_s28, 10 }
  0x58   : > { %478 = vst.msk [vmem:[#allocation2 + $0x30] sm:$0xf] %vm465_vm0, %v3612_v20  ;;  %479 = vst.msk [vmem:[#allocation2 + $0x34] sm:$0xf] %vm465_vm0, %v3612_v20  ;;  %3343 = vmatprep.subr.bf16.mxu1 %v3419_v22  ;;  %v3849_v25 = vld [vmem:[%s4361_s2] ss:$0 sm:$0xff]  ;;  %s4314_s23 = scalar_lea.hbm %s4366_s7, %s3005_s15 }
  0x59   : > { %3123 = vmatpush3.bf16.msra.mxu0 %v3412_v2  ;;  %480 = vst.msk [vmem:[#allocation2 + $0x38] sm:$0xf] %vm465_vm0, %v3612_v20  ;;  %481 = vst.msk [vmem:[#allocation2 + $0x3c] sm:$0xf] %vm465_vm0, %v3612_v20  ;;  %v640_v26 = vld [vmem:[#allocation2] sm:$0xf] }
  0x5a   : > { %3124 = vmatprep.subr.bf16.mxu0 %v3413_v3  ;;  %482 = vst.msk [vmem:[#allocation2 + $0x40] sm:$0xf] %vm465_vm0, %v3612_v20  ;;  %483 = vst.msk [vmem:[#allocation2 + $0x44] sm:$0xf] %vm465_vm0, %v3612_v20  ;;  %v3851_v27 = vld [vmem:[#allocation2 + $0x4] sm:$0xf] }
  0x5b   : > { %484 = vst.msk [vmem:[#allocation2 + $0x48] sm:$0xf] %vm465_vm0, %v3612_v20  ;;  %485 = vst.msk [vmem:[#allocation2 + $0x4c] sm:$0xf] %vm465_vm0, %v3612_v20  ;;  %3345 = vmatpush3.bf16.msra.mxu1 %v3419_v22  ;;  %v3855_v31 = vcombine.low %v640_v26, %v3851_v27  ;;  %vm500_vm1 = vsmask.f32 7938 }
  0x5c   : > { %3162 = vmatprep.subr.bf16.mxu1 %v3843_v24  ;;  %vm506_vm3 = vsmask.f32 256  ;;  %vm3861_vm4 = vmand %vm465_vm0, %vm500_vm1  ;;  %v542_v46 = vld [vmem:[#allocation2 + $0x18] sm:$0xf]  ;;  %v545_v47 = vld [vmem:[#allocation2 + $0x1c] sm:$0x1] }
  0x5d   : > { %3125 = vmatpush3.bf16.msra.mxu0 %v3413_v3  ;;  %v709_v39 = vshll.u32 %v3855_v31, 16  ;;  %vm3865_vm5 = vmand %vm505_vm2, %vm506_vm3  ;;  %v707_v51 = vshrl.u32 %v3855_v31, 16  ;;  %v502_v56 = vld [vmem:[#allocation2 + $0x8] sm:$0xf]  ;;  %v508_v57 = vld [vmem:[#allocation2 + $0xc] sm:$0x1] }
  0x5e   : > { %3126 = vmatprep.subr.bf16.mxu0 %v3414_v7  ;;  %v563_v11 = vld [vmem:[#allocation2 + $0x24] sm:$0x1]  ;;  %v526_v20 = vld [vmem:[#allocation2 + $0x14] sm:$0x1]  ;;  %vm705_vm6 = vsmask.f32 7424 }
  0x5f   : > { %v3872_v62 = vrot.slane %v709_v39, 1  ;;  %s3536_s11 = scalar_lea.vmem %s4309_s3, 1024  ;;  %p4390_p11 = scmp.ne.s32.totalorder %s4378_s22, 0 }
  0x60   : > { %p3537_p3 = scmp.ne.s32.totalorder %s4309_s3, %s3536_s11  ;;  %s3613_s28 = smov [#allocation8]  }
  0x61   : > { %3127 = vmatpush3.bf16.msra.mxu0 %v3414_v7  ;;  %s3540_s20 = sshll.u32 %s3613_s28, 4  ;;  %s3541_s20 = int_to_ptr.vmem [resolvable:$false] %s3540_s20 }
  0x62   : > { %3128 = vmatprep.subr.bf16.mxu0 %v3415_v8  ;;  %p3538_p7 = pnand %p3537_p3, %p4390_p11  ;;  %s3542_s18 = scalar_lea.vmem %s3541_s20, 2048 }
  0x63   : > { %p3543_p10 = scmp.lt.s32.totalorder %s4309_s3, %s3541_s20  ;;  %p3544_p2 = scmp.lt.s32.totalorder %s3542_s18, %s3536_s11 }
  0x64   : > { %p3539_p12 = pneg %p3538_p7 }
  0x65   : > { %3129 = vmatpush3.bf16.msra.mxu0 %v3415_v8  ;;  %p3545_p13 = por %p3544_p2, %p3543_p10 }
  0x66   : > { %3130 = vmatprep.subr.bf16.mxu0 %v3416_v9 }
  0x67   : > { %p3546_p0 = pnand %p3545_p13, %p3539_p12 }
  0x69   : > { %3131 = vmatpush3.bf16.msra.mxu0 %v3416_v9 }
  0x6a   : > { %3132 = vmatprep.subr.bf16.mxu0 %v3417_v10 }
  0x6d   : > { %3133 = vmatpush3.bf16.msra.mxu0 %v3417_v10  ;;  %v560_v10 = vld [vmem:[#allocation2 + $0x20] sm:$0xf] }
  0x6e   : > { %3142 = vmatprep.subr.bf16.mxu0 %v3418_v21 }
  0x70   : > { %3135 = vmatmul.mubr.bf16.vlgmr.msra.gmra.mxu0 %v322_v15 }
  0x71   : > { %3138 = vmatprep.mubr.bf16.mxu0 %v323_v16  ;;  %3143 = vmatpush3.bf16.msra.mxu0 %v3418_v21 }
  0x72   : > { %3144 = vmatprep.subr.bf16.mxu0 %v3419_v22 }
  0x75   : > { %3145 = vmatpush3.bf16.msra.mxu0 %v3419_v22 }
  0x76   : > { %3182 = vmatprep.subr.bf16.mxu0 %v3840_v23 }
  0x78   : > { %3139 = vmatmul.mubr.bf16.gmra.mxu0 %v324_v19  ;;  %v523_v19 = vld [vmem:[#allocation2 + $0x10] sm:$0xf] }
 0x130   : > { %v3136_v28 = vpop.f32.mrf.mxu0 }
 0x131   : > { %v439_v29 = vadd.f32 %v3136_v28, %v3849_v25 }
 0x132   : > { %v430_v30 = vpop.f32.mrf.mxu0 }
 0x133   : > { %v2999_v32 = vpack.c.bf16 %v439_v29, %v439_v29  ;;  %v431_v33 = vadd.f32 %v3849_v25, %v430_v30 }
 0x134   : > { %v3137_v34 = vpop.f32.mrf.mxu0 }
 0x135   : > { %v533_v35 = vshrl.u32 %v2999_v32, 16  ;;  %v2997_v36 = vpack.c.bf16 %v431_v33, %v431_v33  ;;  %v442_v37 = vadd.f32 %v3137_v34, %v3849_v25  ;;  %v536_v42 = vshll.u32 %v2999_v32, 16  ;;  %v616_v34 = vld [vmem:[#allocation2 + $0x38] sm:$0xf] }
 0x136   : > { %v433_v38 = vpop.f32.mrf.mxu0 }
 0x137   : > { %v535_v41 = vrot.slane %v533_v35, 7  ;;  %v490_v43 = vshrl.u32 %v2997_v36, 16  ;;  %v3000_v44 = vpack.c.bf16 %v442_v37, %v442_v37  ;;  %v493_v48 = vshll.u32 %v2997_v36, 16  ;;  %v619_v35 = vld [vmem:[#allocation2 + $0x3c] sm:$0x1] }
 0x138   : > { %v434_v49 = vadd.f32 %v3849_v25, %v433_v38  ;;  %v3140_v50 = vpop.f32.mrf.mxu0 }
 0x139   : > { %v538_v52 = vor.u32 %v536_v42, %v535_v41  ;;  %v539_v53 = vrot.slane %v535_v41, 4  ;;  %v492_v54 = vrot.slane %v490_v43, 7  ;;  %v551_v55 = vshrl.u32 %v3000_v44, 16  ;;  %v1028_v41 = vld [vmem:[#allocation2] sm:$0xe] }
 0x13a   : > { %v554_v58 = vshll.u32 %v3000_v44, 16  ;;  %v2998_v59 = vpack.c.bf16 %v434_v49, %v434_v49  ;;  %v455_v60 = vadd.f32 %v3140_v50, %v3849_v25  ;;  %v446_v61 = vpop.f32.mrf.mxu0  ;;  %v579_v43 = vld [vmem:[#allocation2 + $0x28] sm:$0xf]  ;;  %v582_v44 = vld [vmem:[#allocation2 + $0x2c] sm:$0x1] }
 0x13b   : > { %v543_v63 = vsel %vm3861_vm4, %v538_v52, %v542_v46  ;;  %v546_v0 = vsel %vm3865_vm5, %v539_v53, %v545_v47  ;;  %v495_v1 = vor.u32 %v493_v48, %v492_v54  ;;  %v496_v2 = vrot.slane %v492_v54, 4  ;;  %v634_v53 = vld [vmem:[#allocation2 + $0x40] sm:$0xf]  ;;  %v637_v54 = vld [vmem:[#allocation2 + $0x44] sm:$0x1] }
 0x13c   : > { %544 = vst [vmem:[#allocation2 + $0x18] sm:$0xf] %v543_v63  ;;  %547 = vst [vmem:[#allocation2 + $0x1c] sm:$0x1] %v546_v0  ;;  %v553_v3 = vrot.slane %v551_v55, 7  ;;  %v514_v4 = vshrl.u32 %v2998_v59, 16  ;;  %v3003_v6 = vpack.c.bf16 %v455_v60, %v455_v60  ;;  %v3141_v7 = vpop.f32.mrf.mxu0  ;;  %v447_v12 = vadd.f32 %v3849_v25, %v446_v61 }
 0x13d   : > { %v517_v5 = vshll.u32 %v2998_v59, 16  ;;  %v503_v8 = vsel %vm3861_vm4, %v495_v1, %v502_v56  ;;  %v509_v9 = vsel %vm3865_vm5, %v496_v2, %v508_v57  ;;  %v458_v13 = vadd.f32 %v3141_v7, %v3849_v25 }
 0x13e   : > { %504 = vst [vmem:[#allocation2 + $0x8] sm:$0xf] %v503_v8  ;;  %510 = vst [vmem:[#allocation2 + $0xc] sm:$0x1] %v509_v9  ;;  %v556_v14 = vor.u32 %v554_v58, %v553_v3  ;;  %v557_v15 = vrot.slane %v553_v3, 4  ;;  %v516_v16 = vrot.slane %v514_v4, 7  ;;  %v449_v18 = vpop.f32.mrf.mxu0  ;;  %v3001_v22 = vpack.c.bf16 %v447_v12, %v447_v12 }
 0x13f   : > { %v607_v17 = vshrl.u32 %v3003_v6, 16  ;;  %v610_v21 = vshll.u32 %v3003_v6, 16  ;;  %v3004_v26 = vpack.c.bf16 %v458_v13, %v458_v13  ;;  %v450_v28 = vadd.f32 %v3849_v25, %v449_v18  ;;  %v597_v4 = vld [vmem:[#allocation2 + $0x30] sm:$0xf]  ;;  %v600_v6 = vld [vmem:[#allocation2 + $0x34] sm:$0x1] }
 0x140   : > { %v561_v29 = vsel %vm3861_vm4, %v556_v14, %v560_v10  ;;  %v564_v30 = vsel %vm3865_vm5, %v557_v15, %v563_v11  ;;  %v519_v32 = vor.u32 %v517_v5, %v516_v16  ;;  %v520_v33 = vrot.slane %v516_v16, 4 }
 0x141   : > { %562 = vst [vmem:[#allocation2 + $0x20] sm:$0xf] %v561_v29  ;;  %565 = vst [vmem:[#allocation2 + $0x24] sm:$0x1] %v564_v30  ;;  %v609_v36 = vrot.slane %v607_v17, 7  ;;  %v570_v37 = vshrl.u32 %v3001_v22, 16  ;;  %v3002_v47 = vpack.c.bf16 %v450_v28, %v450_v28  ;;  %v2860_v56 = vcombine.low %v1028_v41, %v3851_v27 }
 0x142   : > { %v573_v38 = vshll.u32 %v3001_v22, 16  ;;  %v625_v39 = vshrl.u32 %v3004_v26, 16  ;;  %v524_v25 = vsel %vm3861_vm4, %v519_v32, %v523_v19  ;;  %v527_v42 = vsel %vm3865_vm5, %v520_v33, %v526_v20 }
 0x143   : > { %v628_v46 = vshll.u32 %v3004_v26, 16  ;;  %525 = vst [vmem:[#allocation2 + $0x10] sm:$0xf] %v524_v25  ;;  %528 = vst [vmem:[#allocation2 + $0x14] sm:$0x1] %v527_v42  ;;  %v612_v48 = vor.u32 %v610_v21, %v609_v36  ;;  %v613_v49 = vrot.slane %v609_v36, 4  ;;  %v712_v7 = vor.u32 %v3872_v62, %v707_v51 }
 0x144   : > { %v572_v50 = vrot.slane %v570_v37, 7  ;;  %v627_v52 = vrot.slane %v625_v39, 7  ;;  %v588_v55 = vshrl.u32 %v3002_v47, 16  ;;  %v3894_v57 = vld [vmem:[#allocation2 + $0x18] sm:$0xff]   ;;  %v591_v3 = vshll.u32 %v3002_v47, 16  ;;  %v3429_v26 = vld [vmem:[#allocation6 + $0x20] sm:$0xff]  }
 0x145   : > { %v617_v58 = vsel %vm3861_vm4, %v612_v48, %v616_v34  ;;  %v620_v59 = vsel %vm3865_vm5, %v613_v49, %v619_v35  ;;  %v3900_v63 = vld [vmem:[#allocation2 + $0x8] sm:$0xff]   ;;  %v730_v51 = vshll.u32 %v3894_v57, 16  ;;  %v1038_v18 = vrot.slane %v2860_v56, 1  ;;  %v3432_v49 = vld [vmem:[#allocation6] sm:$0xff]  }
 0x146   : > { %v575_v60 = vor.u32 %v573_v38, %v572_v50  ;;  %v576_v61 = vrot.slane %v572_v50, 4  ;;  %618 = vst [vmem:[#allocation2 + $0x38] sm:$0xf] %v617_v58  ;;  %621 = vst [vmem:[#allocation2 + $0x3c] sm:$0x1] %v620_v59  ;;  %v630_v0 = vor.u32 %v628_v46, %v627_v52  ;;  %v631_v1 = vrot.slane %v627_v52, 4 }
 0x147   : > { %v590_v2 = vrot.slane %v588_v55, 7  ;;  %v714_v8 = vshll.u32 %v3900_v63, 16  ;;  %v718_v20 = vshrl.u32 %v3900_v63, 16  ;;  %v1039_v40 = vrot.slane %v3900_v63, 1  ;;  %v3434_v50 = vld [vmem:[#allocation6 + $0x48] sm:$0xff]   ;;  %v3433_v55 = vld [vmem:[#allocation6 + $0x38] sm:$0xff]  }
 0x148   : > { %v580_v27 = vsel %vm3861_vm4, %v575_v60, %v579_v43  ;;  %v583_v5 = vsel %vm3865_vm5, %v576_v61, %v582_v44  ;;  %v635_v9 = vsel %vm3861_vm4, %v630_v0, %v634_v53  ;;  %v638_v10 = vsel %vm3865_vm5, %v631_v1, %v637_v54  ;;  %v3914_v13 = vld [vmem:[#allocation2 + $0x20] sm:$0xff]   ;;  %v3437_v0 = vld [vmem:[#allocation6 + $0x40] sm:$0xff]  }
 0x149   : > { %581 = vst [vmem:[#allocation2 + $0x28] sm:$0xf] %v580_v27  ;;  %584 = vst [vmem:[#allocation2 + $0x2c] sm:$0x1] %v583_v5  ;;  %v593_v11 = vor.u32 %v591_v3, %v590_v2  ;;  %v594_v12 = vrot.slane %v590_v2, 4  ;;  %v716_v14 = vrot.slane %v714_v8, 1  ;;  %v1040_v37 = vsel %vm1037_vm8, %v1038_v18, %v1039_v40 }
 0x14a   : > { %636 = vst [vmem:[#allocation2 + $0x40] sm:$0xf] %v635_v9  ;;  %639 = vst [vmem:[#allocation2 + $0x44] sm:$0x1] %v638_v10  ;;  %v3921_v16 = vld [vmem:[#allocation2 + $0x10] sm:$0xff]   ;;  %v738_v19 = vshll.u32 %v3914_v13, 16 }
 0x14b   : > { %v598_v62 = vsel %vm3861_vm4, %v593_v11, %v597_v4  ;;  %v601_v15 = vsel %vm3865_vm5, %v594_v12, %v600_v6  ;;  %v717_v17 = vsel %vm705_vm6, %v712_v7, %v716_v14  ;;  %v722_v21 = vshll.u32 %v3921_v16, 16  ;;  %v1405_v6 = vld [vmem:[#allocation2 + $0x8] sm:$0xf]  ;;  %v3450_v7 = vld [vmem:[#allocation6 + $0x68] sm:$0xff]   ;;  %v3971_v10 = vld [vmem:[#allocation2 + $0xc] sm:$0xf] }
 0x14c   : > { %599 = vst [vmem:[#allocation2 + $0x30] sm:$0xf] %v598_v62  ;;  %602 = vst [vmem:[#allocation2 + $0x34] sm:$0x1] %v601_v15  ;;  %3146 = vmatprep.mubr.msk.bf16.mxu0 %vm781_vm7, %v717_v17  ;;  %v732_v45 = vrot.slane %v730_v51, 1  ;;  %v734_v22 = vshrl.u32 %v3894_v57, 16  ;;  %v720_v30 = vor.u32 %v718_v20, %v716_v14  ;;  %v2889_v14 = vcombine.low %v1405_v6, %v3971_v10 }
 0x14d   : > { %v3930_v28 = vld [vmem:[#allocation2 + $0x38] sm:$0xf]  ;;  %v659_v29 = vld [vmem:[#allocation2 + $0x3c] sm:$0x1]  ;;  %v724_v32 = vrot.slane %v722_v21, 1  ;;  %v726_v33 = vshrl.u32 %v3921_v16, 16 }
 0x14e   : > { %v740_v34 = vrot.slane %v738_v19, 1  ;;  %v736_v39 = vor.u32 %v734_v22, %v732_v45  ;;  %v742_v41 = vshrl.u32 %v3914_v13, 16  ;;  %v3941_v42 = vcombine.low %v3930_v28, %v659_v29  ;;  %v3982_v15 = vld [vmem:[#allocation2 + $0x10] sm:$0xff]   ;;  %v3457_v6 = vld [vmem:[#allocation6 + $0x50] sm:$0xff]  }
 0x14f   : > { %v725_v36 = vsel %vm705_vm6, %v720_v30, %v724_v32  ;;  %v728_v38 = vor.u32 %v726_v33, %v724_v32  ;;  %v1041_v52 = vrot.slane %v3921_v16, 1  ;;  %v1043_v59 = vrot.slane %v3894_v57, 1  ;;  %v3996_v30 = vld [vmem:[#allocation2 + $0x20] sm:$0xff]   ;;  %v3998_v32 = vld [vmem:[#allocation6 + $0x58] sm:$0xff]  }
 0x150   : > { %v3933_v35 = vld [vmem:[#allocation2 + $0x28] sm:$0xff]   ;;  %3147 = vmatmul.mubr.msk.bf16.vlgmr.msra.gmra.mxu0 %vm781_vm7, %v725_v36  ;;  %v741_v46 = vsel %vm705_vm6, %v736_v39, %v740_v34  ;;  %v744_v47 = vor.u32 %v742_v41, %v740_v34  ;;  %v762_v54 = vshll.u32 %v3941_v42, 16  ;;  %v1045_v5 = vrot.slane %v3914_v13, 1 }
 0x151   : > { %v746_v25 = vshll.u32 %v3933_v35, 16  ;;  %3183 = vmatpush3.bf16.msra.mxu0 %v3840_v23  ;;  %3186 = vmatprep.mubr.msk.bf16.mxu0 %vm781_vm7, %v1040_v37  ;;  %v733_v43 = vsel %vm705_vm6, %v728_v38, %v732_v45  ;;  %v750_v60 = vshrl.u32 %v3933_v35, 16  ;;  %v1042_v61 = vsel %vm1037_vm8, %v1039_v40, %v1041_v52  ;;  %v3440_v45 = vld [vmem:[#allocation6 + $0x30] sm:$0xff]   ;;  %v4007_v37 = vld [vmem:[#allocation2 + $0x28] sm:$0xff]  }
 0x152   : > { %3150 = vmatprep.mubr.msk.bf16.mxu1 %vm781_vm7, %v733_v43  ;;  %3184 = vmatprep.subr.bf16.mxu0 %v3429_v26  ;;  %v1044_v1 = vsel %vm1037_vm8, %v1041_v52, %v1043_v59  ;;  %v764_v3 = vrot.slane %v762_v54, 1  ;;  %v1047_v8 = vrot.slane %v3933_v35, 1  ;;  %v766_v9 = vshrl.u32 %v3941_v42, 16  ;;  %v4030_v54 = vld [vmem:[#allocation2 + $0x40] sm:$0x1f]  }
 0x153   : > { %v3946_v44 = vld [vmem:[#allocation2 + $0x30] sm:$0xff]   ;;  %v748_v48 = vrot.slane %v746_v25, 1  ;;  %3151 = vmatmul.mubr.msk.bf16.vlgmr.msra.gmra.mxu1 %vm781_vm7, %v741_v46  ;;  %v1046_v11 = vsel %vm1037_vm8, %v1043_v59, %v1045_v5  ;;  %v1469_v17 = vshll.u32 %v2889_v14, 16  ;;  %v1051_v18 = vrot.slane %v3941_v42, 1 }
 0x154   : > { %v754_v23 = vshll.u32 %v3946_v44, 16  ;;  %3163 = vmatpush3.bf16.msra.mxu1 %v3843_v24  ;;  %v758_v58 = vshrl.u32 %v3946_v44, 16  ;;  %v1048_v12 = vsel %vm1037_vm8, %v1045_v5, %v1047_v8  ;;  %v768_v51 = vor.u32 %v766_v9, %v764_v3  ;;  %v4014_v25 = vld [vmem:[#allocation2 + $0x30] sm:$0xff]   ;;  %v3466_v9 = vld [vmem:[#allocation6 + $0x78] sm:$0xff]  }
 0x155   : > { %v749_v53 = vsel %vm705_vm6, %v744_v47, %v748_v48  ;;  %3185 = vmatpush3.bf16.msra.mxu0 %v3429_v26  ;;  %3164 = vmatprep.subr.bf16.mxu1 %v3432_v49  ;;  %v752_v2 = vor.u32 %v750_v60, %v748_v48  ;;  %v1049_v62 = vrot.slane %v3946_v44, 1  ;;  %v1471_v21 = vrot.slane %v1469_v17, 1  ;;  %v3990_v26 = vld [vmem:[#allocation2 + $0x18] sm:$0xff]   ;;  %v3454_v46 = vld [vmem:[#allocation6 + $0x60] sm:$0xff]  }
 0x156   : > { %3154 = vmatprep.mubr.msk.bf16.mxu1 %vm781_vm7, %v749_v53  ;;  %v756_v56 = vrot.slane %v754_v23, 1  ;;  %3222 = vmatprep.subr.bf16.mxu0 %v3434_v50  ;;  %v1474_v40 = vshll.u32 %v3982_v15, 16  ;;  %v1467_v22 = vshrl.u32 %v2889_v14, 16  ;;  %v1482_v33 = vshll.u32 %v3990_v26, 16  ;;  %v3452_v14 = vld [vmem:[#allocation2 + $0x20] sm:$0xff]   ;;  %v3472_v17 = vld [vmem:[#allocation6 + $0x80] sm:$0xff]  }
 0x157   : > { %v1050_v19 = vsel %vm1037_vm8, %v1047_v8, %v1049_v62  ;;  %v1052_v20 = vsel %vm1037_vm8, %v1049_v62, %v1051_v18  ;;  %v1490_v36 = vshll.u32 %v3996_v30, 16  ;;  %v1486_v39 = vshrl.u32 %v3990_v26, 16  ;;  %v3455_v62 = vld [vmem:[#allocation2 + $0x18] sm:$0xff]  }
 0x158   : > { %v760_v24 = vor.u32 %v758_v58, %v756_v56  ;;  %3187 = vmatmul.mubr.msk.bf16.vlgmr.msra.gmra.mxu0 %vm781_vm7, %v1042_v61  ;;  %3165 = vmatpush3.bf16.msra.mxu1 %v3432_v49  ;;  %v757_v4 = vsel %vm705_vm6, %v752_v2, %v756_v56  ;;  %v1476_v29 = vrot.slane %v1474_v40, 1  ;;  %v1498_v43 = vshll.u32 %v4007_v37, 16  ;;  %v4022_v49 = vld [vmem:[#allocation2 + $0x38] sm:$0xff]  }
 0x159   : > { %3190 = vmatprep.mubr.msk.bf16.mxu0 %vm781_vm7, %v1044_v1  ;;  %3202 = vmatprep.subr.bf16.mxu1 %v3433_v55  ;;  %v1492_v41 = vrot.slane %v1490_v36, 1  ;;  %v1494_v52 = vshrl.u32 %v3996_v30, 16  ;;  %v1502_v23 = vshrl.u32 %v4007_v37, 16  ;;  %v1514_v58 = vshll.u32 %v4022_v49, 16  ;;  %v2323_v36 = vld [vmem:[#allocation2 + $0x10] sm:$0xe] }
 0x15a   : > { %3223 = vmatpush3.bf16.msra.mxu0 %v3434_v50  ;;  %v765_v27 = vsel %vm705_vm6, %v760_v24, %v764_v3  ;;  %v3467_v50 = vld [vmem:[#allocation6 + $0x88] sm:$0xff]   ;;  %v1522_v60 = vshll.u32 %v4030_v54, 16  ;;  %v1510_v61 = vshrl.u32 %v4014_v25, 16  ;;  %v3444_v24 = vld [vmem:[#allocation2 + $0x8] sm:$0xff]   ;;  %v1518_v1 = vshrl.u32 %v4022_v49, 16 }
 0x15b   : > { %3155 = vmatmul.mubr.msk.bf16.gmra.mxu1 %vm781_vm7, %v757_v4  ;;  %3224 = vmatprep.subr.bf16.mxu0 %v3437_v0  ;;  %v1526_v8 = vshrl.u32 %v4030_v54, 16 }
 0x15c   : > { %3158 = vmatprep.mubr.msk.bf16.mxu1 %vm781_vm7, %v765_v27  ;;  %v1524_v3 = vrot.slane %v1522_v60, 1 }
 0x15e   : > { %3225 = vmatpush3.bf16.msra.mxu0 %v3437_v0  ;;  %v1516_v0 = vrot.slane %v1514_v58, 1  ;;  %v1698_v58 = vrot.slane %v4030_v54, 1 }
 0x15f   : > { %3262 = vmatprep.subr.bf16.mxu0 %v3450_v7 }
 0x160   : > { %3191 = vmatmul.mubr.msk.bf16.gmra.mxu0 %vm781_vm7, %v1046_v11  ;;  %v1520_v4 = vor.u32 %v1518_v1, %v1516_v0  ;;  %v1528_v11 = vor.u32 %v1526_v8, %v1524_v3 }
 0x161   : > { %3194 = vmatprep.mubr.msk.bf16.mxu0 %vm781_vm7, %v1048_v12  ;;  %v3451_v12 = vld [vmem:[#allocation2 + $0x10] sm:$0xff]  }
 0x162   : > { %v1525_v5 = vsel %vm705_vm6, %v1520_v4, %v1524_v3 }
 0x163   : > { %3159 = vmatmul.mubr.msk.bf16.gmra.mxu1 %vm781_vm7, %v768_v51  ;;  %v3453_v51 = vld [vmem:[#allocation2 + $0x28] sm:$0xff]  }
 0x164   : > { %3166 = vmatprep.mubr.msk.bf16.mxu1 %vm781_vm7, %v3855_v31  ;;  %v1472_v31 = vor.u32 %v1471_v21, %v1467_v22  ;;  %v1676_v21 = vld [vmem:[#allocation2 + $0x8] sm:$0xe]  ;;  %v3461_v22 = vld [vmem:[#allocation2 + $0x30] sm:$0xff]  }
 0x165   : > { %v2907_v40 = vcombine.low %v1676_v21, %v3971_v10  ;;  %v3464_v10 = vld [vmem:[#allocation2 + $0x38] sm:$0xff]  }
 0x166   : > { %v1477_v34 = vsel %vm705_vm6, %v1472_v31, %v1476_v29  ;;  %v1686_v31 = vrot.slane %v3982_v15, 1 }
 0x168   : > { %3195 = vmatmul.mubr.msk.bf16.gmra.mxu0 %vm781_vm7, %v1050_v19  ;;  %v3458_v19 = vld [vmem:[#allocation2 + $0x30] sm:$0xff]  }
 0x169   : > { %3198 = vmatprep.mubr.msk.bf16.mxu0 %vm781_vm7, %v1052_v20  ;;  %v3459_v20 = vld [vmem:[#allocation2 + $0x38] sm:$0xff]  }
 0x16b   : > { %3167 = vmatmul.mubr.msk.bf16.vlgmr.msra.gmra.mxu1 %vm781_vm7, %v3900_v63  ;;  %v1478_v63 = vshrl.u32 %v3982_v15, 16  ;;  %v1688_v15 = vrot.slane %v3990_v26, 1 }
 0x16c   : > { %3203 = vmatpush3.bf16.msra.mxu1 %v3433_v55  ;;  %3170 = vmatprep.mubr.msk.bf16.mxu1 %vm781_vm7, %v3921_v16  ;;  %v1484_v16 = vrot.slane %v1482_v33, 1  ;;  %v1496_v55 = vor.u32 %v1494_v52, %v1492_v41  ;;  %v4082_v52 = vld [vmem:[#allocation2 + $0x28] sm:$0xff]  }
 0x16d   : > { %3204 = vmatprep.subr.bf16.mxu1 %v3440_v45  ;;  %v1480_v38 = vor.u32 %v1478_v63, %v1476_v29  ;;  %v3462_v29 = vld [vmem:[#allocation2 + $0x40] ss:$0 sps:$4 sm:$0xff]  }
 0x16e   : > { %v1488_v42 = vor.u32 %v1486_v39, %v1484_v16  ;;  %v3465_v63 = vld [vmem:[#allocation2 + $0x40] sm:$0xff]  }
 0x16f   : > { %v1485_v47 = vsel %vm705_vm6, %v1480_v38, %v1484_v16  ;;  %v1690_v16 = vrot.slane %v3996_v30, 1  ;;  %v3475_v39 = vld [vmem:[#allocation6 + $0x70] sm:$0xff]   ;;  %v3468_v30 = vld [vmem:[#allocation2 + $0x48] ss:$0 sps:$4 sm:$0xff]  }
 0x170   : > { %3199 = vmatmul.mubr.msk.bf16.gmra.mxu0 %vm781_vm7, %v1051_v18  ;;  %3205 = vmatpush3.bf16.msra.mxu1 %v3440_v45  ;;  %v1493_v48 = vsel %vm705_vm6, %v1488_v42, %v1492_v41  ;;  %v3456_v18 = vld [vmem:[#allocation2 + $0x20] sm:$0xff]   ;;  %v3460_v45 = vld [vmem:[#allocation2 + $0x28] sm:$0xff]   ;;  %v1689_v41 = vsel %vm1037_vm8, %v1686_v31, %v1688_v15  ;;  %v4072_v42 = vld [vmem:[#allocation2 + $0x18] sm:$0xff]  }
 0x171   : > { %3226 = vmatprep.mubr.msk.bf16.mxu0 %vm781_vm7, %v1477_v34  ;;  %3242 = vmatprep.subr.bf16.mxu1 %v3998_v32  ;;  %v2053_v34 = vld [vmem:[#allocation2 + $0x14] sm:$0xf]  ;;  %v2333_v26 = vrot.slane %v4072_v42, 1  ;;  %v2121_v3 = vshll.u32 %v4072_v42, 16 }
 0x172   : > { %v2954_v38 = vcombine.low %v2323_v36, %v2053_v34 }
 0x173   : > { %3171 = vmatmul.mubr.msk.bf16.gmra.mxu1 %vm781_vm7, %v3894_v57  ;;  %v1506_v57 = vshll.u32 %v4014_v25, 16 }
 0x174   : > { %3174 = vmatprep.mubr.msk.bf16.mxu1 %vm781_vm7, %v3914_v13  ;;  %v1500_v13 = vrot.slane %v1498_v43, 1  ;;  %v1691_v43 = vsel %vm1037_vm8, %v1688_v15, %v1690_v16 }
 0x175   : > { %v1508_v53 = vrot.slane %v1506_v57, 1  ;;  %v3473_v57 = vld [vmem:[#allocation2 + $0x20] sm:$0xff]  }
 0x176   : > { %v1504_v56 = vor.u32 %v1502_v23, %v1500_v13  ;;  %v1501_v59 = vsel %vm705_vm6, %v1496_v55, %v1500_v13  ;;  %v2052_v13 = vld [vmem:[#allocation2 + $0x10] sm:$0xf]  ;;  %v2335_v55 = vrot.slane %v3473_v57, 1  ;;  %v2129_v8 = vshll.u32 %v3473_v57, 16 }
 0x177   : > { %v1512_v2 = vor.u32 %v1510_v61, %v1508_v53 }
 0x178   : > { %3227 = vmatmul.mubr.msk.bf16.vlgmr.msra.gmra.mxu0 %vm781_vm7, %v1485_v47  ;;  %v1692_v47 = vrot.slane %v4007_v37, 1 }
 0x179   : > { %3230 = vmatprep.mubr.msk.bf16.mxu0 %vm781_vm7, %v1493_v48  ;;  %3263 = vmatpush3.bf16.msra.mxu0 %v3450_v7  ;;  %v1517_v27 = vsel %vm705_vm6, %v1512_v2, %v1516_v0  ;;  %v3449_v7 = vld [vmem:[#allocation2 + $0x18] sm:$0xff]   ;;  %v1694_v48 = vrot.slane %v4014_v25, 1  ;;  %v2337_v25 = vrot.slane %v4082_v52, 1 }
 0x17a   : > { %3264 = vmatprep.subr.bf16.mxu0 %v3454_v46  ;;  %v1693_v23 = vsel %vm1037_vm8, %v1690_v16, %v1692_v47 }
 0x17b   : > { %3175 = vmatmul.mubr.msk.bf16.gmra.mxu1 %vm781_vm7, %v3933_v35  ;;  %v1509_v35 = vsel %vm705_vm6, %v1504_v56, %v1508_v53  ;;  %v2936_v53 = vcombine.low %v2052_v13, %v2053_v34  ;;  %v1695_v37 = vsel %vm1037_vm8, %v1692_v47, %v1694_v48  ;;  %v2336_v56 = vsel %vm1037_vm8, %v2333_v26, %v2335_v55 }
 0x17c   : > { %3178 = vmatprep.mubr.msk.bf16.mxu1 %vm781_vm7, %v3946_v44  ;;  %v2849_v44 = vcombine.low %v3930_v28, %v3930_v28  ;;  %v3448_v28 = vld [vmem:[#allocation2 + $0x10] sm:$0xff]   ;;  %v2338_v60 = vsel %vm1037_vm8, %v2335_v55, %v2337_v25  ;;  %v2141_v34 = vshrl.u32 %v4082_v52, 16 }
 0x17d   : > { %3265 = vmatpush3.bf16.msra.mxu0 %v3454_v46  ;;  %v2332_v46 = vrot.slane %v2954_v38, 1  ;;  %v2114_v54 = vshrl.u32 %v2936_v53, 16 }
 0x17e   : > { %3302 = vmatprep.subr.bf16.mxu0 %v3467_v50 }
 0x180   : > { %3231 = vmatmul.mubr.msk.bf16.gmra.mxu0 %vm781_vm7, %v1501_v59  ;;  %v3476_v59 = vld [vmem:[#allocation2 + $0x30] sm:$0xff]  }
 0x181   : > { %3234 = vmatprep.mubr.msk.bf16.mxu0 %vm781_vm7, %v1509_v35  ;;  %v2116_v35 = vshll.u32 %v2936_v53, 16  ;;  %v2339_v1 = vrot.slane %v3476_v59, 1 }
 0x183   : > { %3179 = vmatmul.mubr.msk.bf16.gmra.mxu1 %vm781_vm7, %v2849_v44  ;;  %v1696_v44 = vrot.slane %v4022_v49, 1  ;;  %v2118_v2 = vrot.slane %v2116_v35, 1 }
 0x184   : > { %3206 = vmatprep.mubr.msk.bf16.mxu1 %vm781_vm7, %v3444_v24  ;;  %v3477_v24 = vld [vmem:[#allocation2 + $0x38] sm:$0xff]  }
 0x185   : > { %v1697_v61 = vsel %vm1037_vm8, %v1694_v48, %v1696_v44  ;;  %v1699_v0 = vsel %vm1037_vm8, %v1696_v44, %v1698_v58  ;;  %v2341_v4 = vrot.slane %v3477_v24, 1  ;;  %v2119_v49 = vor.u32 %v2118_v2, %v2114_v54 }
 0x188   : > { %3235 = vmatmul.mubr.msk.bf16.gmra.mxu0 %vm781_vm7, %v1517_v27  ;;  %v2340_v27 = vsel %vm1037_vm8, %v2337_v25, %v2339_v1 }
 0x189   : > { %3238 = vmatprep.mubr.msk.bf16.mxu0 %vm781_vm7, %v1525_v5  ;;  %v3478_v5 = vld [vmem:[#allocation2 + $0x40] sm:$0xff]  }
 0x18b   : > { %3207 = vmatmul.mubr.msk.bf16.vlgmr.msra.gmra.mxu1 %vm781_vm7, %v3448_v28  ;;  %v2342_v28 = vsel %vm1037_vm8, %v2339_v1, %v2341_v4 }
 0x18c   : > { %3243 = vmatpush3.bf16.msra.mxu1 %v3998_v32  ;;  %3210 = vmatprep.mubr.msk.bf16.mxu1 %vm781_vm7, %v3449_v7  ;;  %v1685_v32 = vrot.slane %v2907_v40, 1  ;;  %v2123_v7 = vrot.slane %v2121_v3, 1 }
 0x18d   : > { %3244 = vmatprep.subr.bf16.mxu1 %v3457_v6 }
 0x18e   : > { %v1687_v33 = vsel %vm1037_vm8, %v1685_v32, %v1686_v31  ;;  %v2149_v32 = vshrl.u32 %v3476_v59, 16 }
 0x190   : > { %3239 = vmatmul.mubr.msk.bf16.gmra.mxu0 %vm781_vm7, %v1528_v11  ;;  %3245 = vmatpush3.bf16.msra.mxu1 %v3457_v6  ;;  %v3479_v6 = vld [vmem:[#allocation2 + $0x48] sm:$0x1f]   ;;  %v2343_v11 = vrot.slane %v3478_v5, 1 }
 0x191   : > { %3266 = vmatprep.mubr.msk.bf16.mxu0 %vm781_vm7, %v3451_v12  ;;  %3282 = vmatprep.subr.bf16.mxu1 %v3466_v9  ;;  %v2137_v12 = vshll.u32 %v4082_v52, 16  ;;  %v3481_v52 = vld [vmem:[%s4364_s5] sm:$0xff]  }
 0x193   : > { %3211 = vmatmul.mubr.msk.bf16.gmra.mxu1 %vm781_vm7, %v3452_v14  ;;  %v2345_v14 = vrot.slane %v3479_v6, 1 }
 0x194   : > { %3214 = vmatprep.mubr.msk.bf16.mxu1 %vm781_vm7, %v3453_v51  ;;  %v2131_v51 = vrot.slane %v2129_v8, 1 }
 0x195   : > { %v2346_v40 = vsel %vm1037_vm8, %v2343_v11, %v2345_v14 }
 0x198   : > { %3267 = vmatmul.mubr.msk.bf16.vlgmr.msra.gmra.mxu0 %vm781_vm7, %v3455_v62  ;;  %v2125_v62 = vshrl.u32 %v4072_v42, 16  ;;  %v2157_v42 = vshrl.u32 %v3477_v24, 16 }
 0x199   : > { %3270 = vmatprep.mubr.msk.bf16.mxu0 %vm781_vm7, %v3456_v18  ;;  %3303 = vmatpush3.bf16.msra.mxu0 %v3467_v50  ;;  %v2334_v50 = vsel %vm1037_vm8, %v2332_v46, %v2333_v26  ;;  %v2133_v18 = vshrl.u32 %v3473_v57, 16  ;;  %v2173_v57 = vshrl.u32 %v3479_v6, 16 }
 0x19a   : > { %3304 = vmatprep.subr.bf16.mxu0 %v3472_v17  ;;  %v2127_v21 = vor.u32 %v2125_v62, %v2123_v7 }
 0x19b   : > { %3215 = vmatmul.mubr.msk.bf16.gmra.mxu1 %vm781_vm7, %v3458_v19  ;;  %v2139_v19 = vrot.slane %v2137_v12, 1 }
 0x19c   : > { %3218 = vmatprep.mubr.msk.bf16.mxu1 %vm781_vm7, %v3459_v20  ;;  %v2145_v20 = vshll.u32 %v3476_v59, 16 }
 0x19d   : > { %3305 = vmatpush3.bf16.msra.mxu0 %v3472_v17  ;;  %v2344_v17 = vsel %vm1037_vm8, %v2341_v4, %v2343_v11 }
 0x1a0   : > { %3271 = vmatmul.mubr.msk.bf16.gmra.mxu0 %vm781_vm7, %v3460_v45  ;;  %v2135_v45 = vor.u32 %v2133_v18, %v2131_v51 }
 0x1a1   : > { %3274 = vmatprep.mubr.msk.bf16.mxu0 %vm781_vm7, %v3461_v22  ;;  %v2132_v22 = vsel %vm705_vm6, %v2127_v21, %v2131_v51 }
 0x1a2   : > { %v2140_v31 = vsel %vm705_vm6, %v2135_v45, %v2139_v19 }
 0x1a3   : > { %3219 = vmatmul.mubr.msk.bf16.gmra.mxu1 %vm781_vm7, %v3462_v29  ;;  %v2147_v29 = vrot.slane %v2145_v20, 1 }
 0x1a4   : > { %3246 = vmatprep.mubr.msk.bf16.mxu1 %vm781_vm7, %v1687_v33  ;;  %v2153_v33 = vshll.u32 %v3477_v24, 16 }
 0x1a5   : > { %v2151_v36 = vor.u32 %v2149_v32, %v2147_v29 }
 0x1a6   : > { %v2155_v16 = vrot.slane %v2153_v33, 1 }
 0x1a8   : > { %3275 = vmatmul.mubr.msk.bf16.gmra.mxu0 %vm781_vm7, %v3464_v10  ;;  %v2161_v10 = vshll.u32 %v3478_v5, 16  ;;  %v2156_v38 = vsel %vm705_vm6, %v2151_v36, %v2155_v16  ;;  %v2159_v26 = vor.u32 %v2157_v42, %v2155_v16 }
 0x1a9   : > { %3278 = vmatprep.mubr.msk.bf16.mxu0 %vm781_vm7, %v3465_v63  ;;  %v2143_v63 = vor.u32 %v2141_v34, %v2139_v19 }
 0x1ab   : > { %3247 = vmatmul.mubr.msk.bf16.vlgmr.msra.gmra.mxu1 %vm781_vm7, %v1689_v41  ;;  %v2148_v15 = vsel %vm705_vm6, %v2143_v63, %v2147_v29  ;;  %v2169_v41 = vshll.u32 %v3479_v6, 16 }
 0x1ac   : > { %3283 = vmatpush3.bf16.msra.mxu1 %v3466_v9  ;;  %3250 = vmatprep.mubr.msk.bf16.mxu1 %vm781_vm7, %v1691_v43  ;;  %v2124_v9 = vsel %vm705_vm6, %v2119_v49, %v2123_v7  ;;  %v2165_v43 = vshrl.u32 %v3478_v5, 16 }
 0x1ad   : > { %3284 = vmatprep.subr.bf16.mxu1 %v3475_v39  ;;  %v2171_v46 = vrot.slane %v2169_v41, 1 }
 0x1af   : > { %v2175_v13 = vor.u32 %v2173_v57, %v2171_v46 }
 0x1b0   : > { %3279 = vmatmul.mubr.msk.bf16.gmra.mxu0 %vm781_vm7, %v3468_v30  ;;  %3285 = vmatpush3.bf16.msra.mxu1 %v3475_v39  ;;  %v2163_v39 = vrot.slane %v2161_v10, 1 }
 0x1b1   : > { %3306 = vmatprep.mubr.msk.bf16.mxu0 %vm781_vm7, %v2334_v50  ;;  %v3480_v50 = vld [vmem:[%s4364_s5 + $0x8] sm:$0xff]  }
 0x1b2   : > { %v2167_v30 = vor.u32 %v2165_v43, %v2163_v39  ;;  %v2164_v47 = vsel %vm705_vm6, %v2159_v26, %v2163_v39  ;;  %3322 = vmatprep.subr.bf16.mxu1 %v3480_v50 }
 0x1b3   : > { %3251 = vmatmul.mubr.msk.bf16.gmra.mxu1 %vm781_vm7, %v1693_v23 }
 0x1b4   : > { %3254 = vmatprep.mubr.msk.bf16.mxu1 %vm781_vm7, %v1695_v37  ;;  %v2172_v48 = vsel %vm705_vm6, %v2167_v30, %v2171_v46 }
 0x1b8   : > { %3307 = vmatmul.mubr.msk.bf16.vlgmr.msra.gmra.mxu0 %vm781_vm7, %v2336_v56 }
 0x1b9   : > { %3310 = vmatprep.mubr.msk.bf16.mxu0 %vm781_vm7, %v2338_v60 }
 0x1bb   : > { %3255 = vmatmul.mubr.msk.bf16.gmra.mxu1 %vm781_vm7, %v1697_v61 }
 0x1bc   : > { %3258 = vmatprep.mubr.msk.bf16.mxu1 %vm781_vm7, %v1699_v0 }
 0x1c0   : > { %3311 = vmatmul.mubr.msk.bf16.gmra.mxu0 %vm781_vm7, %v2340_v27 }
 0x1c1   : > { %3314 = vmatprep.mubr.msk.bf16.mxu0 %vm781_vm7, %v2342_v28 }
 0x1c3   : > { %3259 = vmatmul.mubr.msk.bf16.gmra.mxu1 %vm781_vm7, %v1698_v58 }
 0x1c4   : > { %3286 = vmatprep.mubr.msk.bf16.mxu1 %vm781_vm7, %v2124_v9 }
 0x1c8   : > { %3315 = vmatmul.mubr.msk.bf16.gmra.mxu0 %vm781_vm7, %v2344_v17 }
 0x1c9   : > { %3318 = vmatprep.mubr.msk.bf16.mxu0 %vm781_vm7, %v2346_v40 }
 0x1cb   : > { %3287 = vmatmul.mubr.msk.bf16.vlgmr.msra.gmra.mxu1 %vm781_vm7, %v2132_v22 }
 0x1cc   : > { %3290 = vmatprep.mubr.msk.bf16.mxu1 %vm781_vm7, %v2140_v31  ;;  %3323 = vmatpush3.bf16.msra.mxu1 %v3480_v50 }
 0x1cd   : > { %3324 = vmatprep.subr.bf16.mxu1 %v3481_v52 }
 0x1d0   : > { %3319 = vmatmul.mubr.msk.bf16.gmra.mxu0 %vm781_vm7, %v2345_v14  ;;  %3325 = vmatpush3.bf16.msra.mxu1 %v3481_v52 }
 0x1d3   : > { %3291 = vmatmul.mubr.msk.bf16.gmra.mxu1 %vm781_vm7, %v2148_v15 }
 0x1d4   : > { %3294 = vmatprep.mubr.msk.bf16.mxu1 %vm781_vm7, %v2156_v38 }
 0x1db   : > { %3295 = vmatmul.mubr.msk.bf16.gmra.mxu1 %vm781_vm7, %v2164_v47 }
 0x1dc   : > { %3298 = vmatprep.mubr.msk.bf16.mxu1 %vm781_vm7, %v2172_v48 }
 0x1e3   : > { %3299 = vmatmul.mubr.msk.bf16.gmra.mxu1 %vm781_vm7, %v2175_v13 }
 0x210   : > { %v3148_v23 = vpop.f32.mrf.mxu0 }
 0x212   : > { %v840_v53 = vpop.f32.mrf.mxu0 }
 0x213   : > { %v3152_v37 = vpop.f32.mrf.mxu1 }
 0x214   : > { %v3149_v55 = vpop.f32.mrf.mxu0 }
 0x215   : > { %v856_v25 = vpop.f32.mrf.mxu1 }
 0x216   : > { %v843_v56 = vpop.f32.mrf.mxu0 }
 0x217   : > { %v3153_v58 = vpop.f32.mrf.mxu1 }
 0x218   : > { %v3188_v59 = vpop.f32.mrf.mxu0 }
 0x219   : > { %v859_v35 = vpop.f32.mrf.mxu1 }
 0x21a   : > { %v1123_v60 = vpop.f32.mrf.mxu0 }
 0x21b   : > { %v3156_v44 = vpop.f32.mrf.mxu1 }
 0x21c   : > { %v3189_v61 = vpop.f32.mrf.mxu0 }
 0x21d   : > { %v872_v24 = vpop.f32.mrf.mxu1 }
 0x21e   : > { %v1126_v0 = vpop.f32.mrf.mxu0 }
 0x21f   : > { %v3157_v1 = vpop.f32.mrf.mxu1 }
 0x220   : > { %v3192_v2 = vpop.f32.mrf.mxu0 }
 0x221   : > { %v875_v54 = vpop.f32.mrf.mxu1 }
 0x222   : > { %v1139_v3 = vpop.f32.mrf.mxu0 }
 0x223   : > { %v3160_v4 = vpop.f32.mrf.mxu1 }
 0x224   : > { %v3193_v27 = vpop.f32.mrf.mxu0 }
 0x225   : > { %v888_v49 = vpop.f32.mrf.mxu1 }
 0x226   : > { %v1142_v5 = vpop.f32.mrf.mxu0 }
 0x227   : > { %v3161_v28 = vpop.f32.mrf.mxu1 }
 0x228   : > { %v3196_v6 = vpop.f32.mrf.mxu0 }
 0x229   : > { %v891_v7 = vpop.f32.mrf.mxu1 }
 0x22a   : > { %v1155_v8 = vpop.f32.mrf.mxu0 }
 0x22b   : > { %v3168_v9 = vpop.f32.mrf.mxu1 }
 0x22c   : > { %v975_v11 = vadd.f32 %v3168_v9, %v3148_v23  ;;  %v3197_v12 = vpop.f32.mrf.mxu0 }
 0x22d   : > { %v966_v14 = vpop.f32.mrf.mxu1 }
 0x22e   : > { %v967_v51 = vadd.f32 %v966_v14, %v840_v53  ;;  %v1158_v62 = vpop.f32.mrf.mxu0  ;;  %v1187_v17 = vadd.f32 %v3188_v59, %v975_v11 }
 0x22f   : > { %v3169_v18 = vpop.f32.mrf.mxu1 }
 0x230   : > { %v978_v19 = vadd.f32 %v3169_v18, %v3149_v55  ;;  %v3200_v20 = vpop.f32.mrf.mxu0  ;;  %v1185_v21 = vadd.f32 %v1123_v60, %v967_v51 }
 0x231   : > { %v969_v40 = vpop.f32.mrf.mxu1 }
 0x232   : > { %v970_v45 = vadd.f32 %v969_v40, %v843_v56  ;;  %v1171_v22 = vpop.f32.mrf.mxu0  ;;  %v1188_v31 = vadd.f32 %v3189_v61, %v978_v19 }
 0x233   : > { %v3172_v29 = vpop.f32.mrf.mxu1 }
 0x234   : > { %v991_v32 = vadd.f32 %v3172_v29, %v3152_v37  ;;  %v3201_v33 = vpop.f32.mrf.mxu0  ;;  %v1186_v34 = vadd.f32 %v1126_v0, %v970_v45 }
 0x235   : > { %v982_v36 = vpop.f32.mrf.mxu1 }
 0x236   : > { %v983_v10 = vadd.f32 %v982_v36, %v856_v25  ;;  %v1174_v63 = vpop.f32.mrf.mxu0  ;;  %v1191_v16 = vadd.f32 %v3192_v2, %v991_v32 }
 0x237   : > { %v3173_v15 = vpop.f32.mrf.mxu1 }
 0x238   : > { %v994_v38 = vadd.f32 %v3173_v15, %v3153_v58  ;;  %v3228_v39 = vpop.f32.mrf.mxu0  ;;  %v1189_v41 = vadd.f32 %v1139_v3, %v983_v10 }
 0x239   : > { %v985_v42 = vpop.f32.mrf.mxu1 }
 0x23a   : > { %v986_v43 = vadd.f32 %v985_v42, %v859_v35  ;;  %v1599_v30 = vpop.f32.mrf.mxu0  ;;  %v1192_v46 = vadd.f32 %v3193_v27, %v994_v38 }
 0x23b   : > { %v3176_v26 = vpop.f32.mrf.mxu1 }
 0x23c   : > { %v1007_v47 = vadd.f32 %v3176_v26, %v3156_v44  ;;  %v3229_v48 = vpop.f32.mrf.mxu0  ;;  %v1190_v57 = vadd.f32 %v1142_v5, %v986_v43 }
 0x23d   : > { %v998_v13 = vpop.f32.mrf.mxu1 }
 0x23e   : > { %v999_v50 = vadd.f32 %v998_v13, %v872_v24  ;;  %v1602_v52 = vpop.f32.mrf.mxu0  ;;  %v1195_v23 = vadd.f32 %v3196_v6, %v1007_v47 }
 0x23f   : > { %v3177_v53 = vpop.f32.mrf.mxu1 }
 0x240   : > { %v1010_v37 = vadd.f32 %v3177_v53, %v3157_v1  ;;  %v3232_v55 = vpop.f32.mrf.mxu0  ;;  %v1193_v25 = vadd.f32 %v1155_v8, %v999_v50 }
 0x241   : > { %v1001_v56 = vpop.f32.mrf.mxu1 }
 0x242   : > { %v1002_v58 = vadd.f32 %v1001_v56, %v875_v54  ;;  %v1615_v59 = vpop.f32.mrf.mxu0  ;;  %v1196_v60 = vadd.f32 %v3197_v12, %v1010_v37 }
 0x243   : > { %v3180_v61 = vpop.f32.mrf.mxu1 }
 0x244   : > { %v1023_v35 = vadd.f32 %v3180_v61, %v3160_v4  ;;  %v3233_v0 = vpop.f32.mrf.mxu0  ;;  %v1194_v2 = vadd.f32 %v1158_v62, %v1002_v58 }
 0x245   : > { %v1014_v3 = vpop.f32.mrf.mxu1 }
 0x246   : > { %v1015_v44 = vadd.f32 %v1014_v3, %v888_v49  ;;  %v1618_v27 = vpop.f32.mrf.mxu0  ;;  %v1199_v5 = vadd.f32 %v3200_v20, %v1023_v35 }
 0x247   : > { %v3181_v28 = vpop.f32.mrf.mxu1 }
 0x248   : > { %v3236_v24 = vpop.f32.mrf.mxu0  ;;  %v1197_v9 = vadd.f32 %v1171_v22, %v1015_v44 }
 0x249   : > { %v1017_v6 = vpop.f32.mrf.mxu1 }
 0x24a   : > { %v1018_v11 = vadd.f32 %v1017_v6, %v891_v7  ;;  %v1631_v1 = vpop.f32.mrf.mxu0 }
 0x24b   : > { %v3208_v14 = vpop.f32.mrf.mxu1 }
 0x24c   : > { %v1392_v8 = vadd.f32 %v3208_v14, %v1187_v17  ;;  %v3237_v51 = vpop.f32.mrf.mxu0  ;;  %v1198_v54 = vadd.f32 %v1174_v63, %v1018_v11 }
 0x24d   : > { %v1328_v18 = vpop.f32.mrf.mxu1 }
 0x24e   : > { %v1390_v12 = vadd.f32 %v1328_v18, %v1185_v21  ;;  %v1634_v19 = vpop.f32.mrf.mxu0  ;;  %v4135_v4 = vadd.f32 %v3228_v39, %v1392_v8 }
 0x24f   : > { %v3209_v62 = vpop.f32.mrf.mxu1 }
 0x250   : > { %v1393_v40 = vadd.f32 %v3209_v62, %v1188_v31  ;;  %v3240_v49 = vpop.f32.mrf.mxu0  ;;  %v4137_v45 = vadd.f32 %v1599_v30, %v1390_v12 }
 0x251   : > { %v1331_v20 = vpop.f32.mrf.mxu1 }
 0x252   : > { %v1391_v29 = vadd.f32 %v1331_v20, %v1186_v34  ;;  %v1647_v22 = vpop.f32.mrf.mxu0  ;;  %v4139_v32 = vadd.f32 %v3229_v48, %v1393_v40 }
 0x253   : > { %v3212_v7 = vpop.f32.mrf.mxu1 }
 0x254   : > { %v1396_v33 = vadd.f32 %v3212_v7, %v1191_v16  ;;  %v3241_v17 = vpop.f32.mrf.mxu0  ;;  %v4141_v36 = vadd.f32 %v1602_v52, %v1391_v29 }
 0x255   : > { %v1344_v10 = vpop.f32.mrf.mxu1 }
 0x256   : > { %v1394_v21 = vadd.f32 %v1344_v10, %v1189_v41  ;;  %v1650_v63 = vpop.f32.mrf.mxu0  ;;  %v4143_v15 = vadd.f32 %v3232_v55, %v1396_v33 }
 0x257   : > { %v3213_v38 = vpop.f32.mrf.mxu1 }
 0x258   : > { %v1397_v31 = vadd.f32 %v3213_v38, %v1192_v46  ;;  %v4145_v39 = vpop.f32.mrf.mxu0  ;;  %v4147_v42 = vadd.f32 %v1615_v59, %v1394_v21 }
 0x259   : > { %v1347_v34 = vpop.f32.mrf.mxu1 }
 0x25a   : > { %v1395_v43 = vadd.f32 %v1347_v34, %v1190_v57  ;;  %v4149_v30 = vpop.f32.mrf.mxu0  ;;  %v4151_v26 = vadd.f32 %v3233_v0, %v1397_v31 }
 0x25b   : > { %v3216_v16 = vpop.f32.mrf.mxu1 }
 0x25c   : > { %v1400_v47 = vadd.f32 %v3216_v16, %v1195_v23  ;;  %v4153_v48 = vpop.f32.mrf.mxu0  ;;  %v4155_v41 = vadd.f32 %v1618_v27, %v1395_v43 }
 0x25d   : > { %v1360_v13 = vpop.f32.mrf.mxu1 }
 0x25e   : > { %v1398_v50 = vadd.f32 %v1360_v13, %v1193_v25  ;;  %v4157_v52 = vpop.f32.mrf.mxu0  ;;  %v4159_v46 = vadd.f32 %v3236_v24, %v1400_v47 }
 0x25f   : > { %v3217_v53 = vpop.f32.mrf.mxu1 }
 0x260   : > { %v1401_v37 = vadd.f32 %v3217_v53, %v1196_v60  ;;  %v4161_v55 = vpop.f32.mrf.mxu0  ;;  %v4163_v57 = vadd.f32 %v1631_v1, %v1398_v50 }
 0x261   : > { %v1363_v56 = vpop.f32.mrf.mxu1 }
 0x262   : > { %v1399_v58 = vadd.f32 %v1363_v56, %v1194_v2  ;;  %v4165_v59 = vpop.f32.mrf.mxu0  ;;  %v4167_v23 = vadd.f32 %v3237_v51, %v1401_v37 }
 0x263   : > { %v3220_v61 = vpop.f32.mrf.mxu1 }
 0x264   : > { %v1404_v35 = vadd.f32 %v3220_v61, %v1199_v5  ;;  %v4169_v0 = vpop.f32.mrf.mxu0  ;;  %v4171_v25 = vadd.f32 %v1634_v19, %v1399_v58 }
 0x265   : > { %v1376_v3 = vpop.f32.mrf.mxu1 }
 0x266   : > { %v1402_v44 = vadd.f32 %v1376_v3, %v1197_v9  ;;  %v4173_v27 = vpop.f32.mrf.mxu0  ;;  %v4175_v60 = vadd.f32 %v3240_v49, %v1404_v35 }
 0x267   : > { %v3221_v28 = vpop.f32.mrf.mxu1 }
 0x268   : > { %v4177_v24 = vpop.f32.mrf.mxu0  ;;  %v4179_v2 = vadd.f32 %v1647_v22, %v1402_v44 }
 0x269   : > { %v1379_v6 = vpop.f32.mrf.mxu1 }
 0x26a   : > { %v1403_v11 = vadd.f32 %v1379_v6, %v1198_v54  ;;  %v4181_v1 = vpop.f32.mrf.mxu0 }
 0x26b   : > { %v3248_v5 = vpop.f32.mrf.mxu1 }
 0x26c   : > { %v4183_v14 = vpop.f32.mrf.mxu0  ;;  %v4185_v8 = vadd.f32 %v1650_v63, %v1403_v11  ;;  %v1834_v50 = vadd.f32 %v3248_v5, %v4135_v4 }
 0x26d   : > { %v1770_v51 = vpop.f32.mrf.mxu1 }
 0x26e   : > { %v4187_v9 = vpop.f32.mrf.mxu0  ;;  %v1832_v56 = vadd.f32 %v1770_v51, %v4137_v45  ;;  %v2039_v44 = vadd.f32 %v4145_v39, %v1834_v50 }
 0x26f   : > { %v3249_v18 = vpop.f32.mrf.mxu1 }
 0x270   : > { %v4189_v12 = vpop.f32.mrf.mxu0  ;;  %v1835_v35 = vadd.f32 %v3249_v18, %v4139_v32  ;;  %v2037_v5 = vadd.f32 %v4149_v30, %v1832_v56 }
 0x271   : > { %v1773_v19 = vpop.f32.mrf.mxu1 }
 0x272   : > { %v4191_v62 = vpop.f32.mrf.mxu0  ;;  %v1833_v6 = vadd.f32 %v1773_v19, %v4141_v36  ;;  %v2040_v32 = vadd.f32 %v4153_v48, %v1835_v35 }
 0x273   : > { %v3252_v40 = vpop.f32.mrf.mxu1 }
 0x274   : > { %v3281_v49 = vpop.f32.mrf.mxu0  ;;  %v1838_v45 = vadd.f32 %v3252_v40, %v4143_v15  ;;  %v2038_v36 = vadd.f32 %v4157_v52, %v1833_v6  ;;  %v4229_v15 = vld [vmem:[%s4363_s4] ss:$0 sm:$0xff] }
 0x275   : > { %v1786_v20 = vpop.f32.mrf.mxu1 }
 0x276   : > { %v4193_v54 = vpop.f32.mrf.mxu0  ;;  %v1836_v18 = vadd.f32 %v1786_v20, %v4147_v42  ;;  %v2043_v42 = vadd.f32 %v4161_v55, %v1838_v45 }
 0x277   : > { %4388 = vst [vmem:[#allocation12_spill] sm:$0xff] %v4193_v54  ;;  %v3253_v29 = vpop.f32.mrf.mxu1 }
 0x278   : > { %v3308_v22 = vpop.f32.mrf.mxu0 }
 0x279   : > { %v1789_v7 = vpop.f32.mrf.mxu1 }
 0x27a   : > { %v2417_v33 = vpop.f32.mrf.mxu0 }
 0x27b   : > { %v3256_v17 = vpop.f32.mrf.mxu1 }
 0x27c   : > { %v3309_v10 = vpop.f32.mrf.mxu0 }
 0x27d   : > { %v1802_v21 = vpop.f32.mrf.mxu1 }
 0x27e   : > { %v2420_v63 = vpop.f32.mrf.mxu0 }
 0x27f   : > { %v3257_v38 = vpop.f32.mrf.mxu1 }
 0x280   : > { %v3312_v31 = vpop.f32.mrf.mxu0 }
 0x281   : > { %v4195_v34 = vpop.f32.mrf.mxu1 }
 0x282   : > { %v2433_v43 = vpop.f32.mrf.mxu0 }
 0x283   : > { %v4197_v16 = vpop.f32.mrf.mxu1 }
 0x284   : > { %v3313_v47 = vpop.f32.mrf.mxu0 }
 0x285   : > { %v4199_v13 = vpop.f32.mrf.mxu1 }
 0x286   : > { %v4202_v53 = vpop.f32.mrf.mxu0 }
 0x287   : > { %v3261_v37 = vpop.f32.mrf.mxu1 }
 0x288   : > { %v4205_v58 = vpop.f32.mrf.mxu0 }
 0x289   : > { %v4207_v61 = vpop.f32.mrf.mxu1 }
 0x28a   : > { %v4210_v3 = vpop.f32.mrf.mxu0 }
 0x28b   : > { %v3288_v28 = vpop.f32.mrf.mxu1 }
 0x28c   : > { %v2310_v11 = vadd.f32 %v3288_v28, %v2039_v44  ;;  %v4214_v4 = vpop.f32.mrf.mxu0  ;;  %v1839_v44 = vadd.f32 %v3253_v29, %v4151_v26 }
 0x28d   : > { %v2246_v49 = vpop.f32.mrf.mxu1 }
 0x28e   : > { %v2308_v51 = vadd.f32 %v2246_v49, %v2037_v5  ;;  %v4218_v37 = vpop.f32.mrf.mxu0  ;;  %v2481_v39 = vadd.f32 %v3308_v22, %v2310_v11  ;;  %v2041_v22 = vadd.f32 %v4165_v59, %v1836_v18  ;;  %v2044_v11 = vadd.f32 %v4169_v0, %v1839_v44 }
 0x28f   : > { %v3289_v54 = vpop.f32.mrf.mxu1  ;;  %v1840_v59 = vadd.f32 %v1802_v21, %v4163_v57  ;;  %v1843_v18 = vadd.f32 %v3257_v38, %v4167_v23 }
 0x290   : > { %v2311_v50 = vadd.f32 %v3289_v54, %v2040_v32  ;;  %v4223_v19 = vpop.f32.mrf.mxu0  ;;  %v2479_v40 = vadd.f32 %v2417_v33, %v2308_v51  ;;  %v1837_v54 = vadd.f32 %v1789_v7, %v4155_v41  ;;  %v2503_v26 = vadd.f32 %v4229_v15, %v2481_v39 }
 0x291   : > { %v2249_v30 = vpop.f32.mrf.mxu1  ;;  %v1842_v33 = vadd.f32 %v3256_v17, %v4159_v46  ;;  %v2045_v21 = vadd.f32 %v4181_v1, %v1840_v59  ;;  %v1844_v1 = vadd.f32 %v4199_v13, %v4179_v2  ;;  %v1845_v13 = vadd.f32 %v4207_v61, %v4185_v8 }
 0x292   : > { %v2482_v56 = vadd.f32 %v3309_v10, %v2311_v50  ;;  %v2309_v48 = vadd.f32 %v2249_v30, %v2038_v36  ;;  %v4232_v20 = vpop.f32.mrf.mxu0  ;;  %v2501_v55 = vadd.f32 %v4229_v15, %v2479_v40  ;;  %v1841_v36 = vadd.f32 %v4195_v34, %v4171_v25 }
 0x293   : > { %v3292_v52 = vpop.f32.mrf.mxu1  ;;  %v2047_v50 = vadd.f32 %v4177_v24, %v1842_v33  ;;  %v1846_v30 = vadd.f32 %v4197_v16, %v4175_v60  ;;  %v2049_v2 = vadd.f32 %v4191_v62, %v1844_v1  ;;  %v4389_v62 = vld [vmem:[#allocation12_spill] sm:$0xff]  ;;  %v2985_v1 = vld [vmem:[%s3778_s16 + $0x28] sm:$0xff] }
 0x294   : > { %v2504_v29 = vadd.f32 %v4229_v15, %v2482_v56  ;;  %v2480_v35 = vadd.f32 %v2420_v63, %v2309_v48  ;;  %v2314_v28 = vadd.f32 %v3292_v52, %v2043_v42  ;;  %v3321_v6 = vpop.f32.mrf.mxu0  ;;  %v2042_v63 = vadd.f32 %v4173_v27, %v1837_v54 }
 0x295   : > { %v2262_v10 = vpop.f32.mrf.mxu1  ;;  %v2046_v42 = vadd.f32 %v4187_v9, %v1841_v36  ;;  %v2051_v60 = vadd.f32 %v4189_v12, %v1846_v30 }
 0x296   : > { %v2517_v5 = vpack.c.bf16 %v2504_v29, %v2503_v26  ;;  %v2502_v41 = vadd.f32 %v4229_v15, %v2480_v35  ;;  %v2312_v7 = vadd.f32 %v2262_v10, %v2041_v22  ;;  %v2485_v51 = vadd.f32 %v3312_v31, %v2314_v28 }
 0x297   : > { %v3293_v49 = vpop.f32.mrf.mxu1  ;;  %v2050_v10 = vadd.f32 %v4389_v62, %v1845_v13 }
 0x298   : > { %v2516_v45 = vpack.c.bf16 %v2502_v41, %v2501_v55  ;;  %v2315_v32 = vadd.f32 %v3293_v49, %v2044_v11  ;;  %v2483_v17 = vadd.f32 %v2433_v43, %v2312_v7  ;;  %v2507_v27 = vadd.f32 %v4229_v15, %v2485_v51  ;;  %v2977_v51 = vld [vmem:[%s3778_s16 + $0x8] sm:$0xff] }
 0x299   : > { %v2265_v46 = vpop.f32.mrf.mxu1 }
 0x29a   : > { %v2486_v39 = vadd.f32 %v3313_v47, %v2315_v32  ;;  %v2313_v0 = vadd.f32 %v2265_v46, %v2042_v63  ;;  %3326 = vmatprep.mubr.msk.bf16.mxu1 %vm781_vm7, %v2516_v45  ;;  %v2048_v47 = vadd.f32 %v4183_v14, %v1843_v18  ;;  %v2505_v24 = vadd.f32 %v4229_v15, %v2483_v17  ;;  %v2660_v18 = vld [vmem:[%s3778_s16] sm:$0xff] }
 0x29b   : > { %v3296_v57 = vpop.f32.mrf.mxu1  ;;  %3327 = vmatmul.mubr.msk.bf16.vlgmr.msra.gmra.mxu1 %vm781_vm7, %v2517_v5 }
 0x29c   : > { %v2508_v23 = vadd.f32 %v4229_v15, %v2486_v39  ;;  %v2484_v38 = vadd.f32 %v4202_v53, %v2313_v0  ;;  %v2318_v31 = vadd.f32 %v3296_v57, %v2047_v50 }
 0x29d   : > { %v2278_v43 = vpop.f32.mrf.mxu1 }
 0x29e   : > { %v2519_v44 = vpack.c.bf16 %v2508_v23, %v2507_v27  ;;  %v2506_v25 = vadd.f32 %v4229_v15, %v2484_v38  ;;  %v2316_v34 = vadd.f32 %v2278_v43, %v2045_v21  ;;  %v2489_v53 = vadd.f32 %v4205_v58, %v2318_v31  ;;  %v2981_v21 = vld [vmem:[%s3778_s16 + $0x18] sm:$0xff]  ;;  %v2979_v38 = vld [vmem:[%s3778_s16 + $0x10] sm:$0xff] }
 0x29f   : > { %v3297_v40 = vpop.f32.mrf.mxu1 }
 0x2a0   : > { %v2518_v56 = vpack.c.bf16 %v2506_v25, %v2505_v24  ;;  %v2319_v48 = vadd.f32 %v3297_v40, %v2048_v47  ;;  %v2487_v54 = vadd.f32 %v4210_v3, %v2316_v34  ;;  %v2511_v9 = vadd.f32 %v4229_v15, %v2489_v53  ;;  %v2983_v53 = vld [vmem:[%s3778_s16 + $0x20] sm:$0xff] }
 0x2a1   : > { %v2281_v14 = vpop.f32.mrf.mxu1 }
 0x2a2   : > { %v2490_v52 = vadd.f32 %v4214_v4, %v2319_v48  ;;  %v2317_v22 = vadd.f32 %v2281_v14, %v2046_v42  ;;  %3330 = vmatprep.mubr.msk.bf16.mxu1 %vm781_vm7, %v2518_v56  ;;  %v2509_v29 = vadd.f32 %v4229_v15, %v2487_v54 }
 0x2a3   : > { %v3300_v16 = vpop.f32.mrf.mxu1  ;;  %3331 = vmatmul.mubr.msk.bf16.gmra.mxu1 %vm781_vm7, %v2519_v44 }
 0x2a4   : > { %v2512_v58 = vadd.f32 %v4229_v15, %v2490_v52  ;;  %v2488_v3 = vadd.f32 %v4218_v37, %v2317_v22  ;;  %v2322_v4 = vadd.f32 %v3300_v16, %v2051_v60  ;;  %v2468_v37 = vpop.f32.mrf.mxu0 }
 0x2a5   : > { %v2294_v26 = vpop.f32.mrf.mxu1 }
 0x2a6   : > { %v2521_v35 = vpack.c.bf16 %v2512_v58, %v2511_v9  ;;  %v2510_v12 = vadd.f32 %v4229_v15, %v2488_v3  ;;  %v2320_v28 = vadd.f32 %v2294_v26, %v2049_v2  ;;  %v2493_v8 = vadd.f32 %v4223_v19, %v2322_v4  ;;  %v2989_v2 = vld [vmem:[%s3778_s16 + $0x38] sm:$0xff]  ;;  %v2987_v58 = vld [vmem:[%s3778_s16 + $0x30] sm:$0xff]  ;;  %s2707_s16 = scalar_lea.sflag [#allocation5], %s3772_s10 }
 0x2a7   : > { %v3301_v6 = vpop.f32.mrf.mxu1 }
 0x2a8   : > { %v2520_v33 = vpack.c.bf16 %v2510_v12, %v2509_v29  ;;  %v2491_v11 = vadd.f32 %v4232_v20, %v2320_v28  ;;  %v2515_v41 = vadd.f32 %v4229_v15, %v2493_v8  ;;  %v2966_v20 = vld [vmem:[%s4365_s6] ss:$0 sm:$0xff] }
 0x2a9   : > { %v2297_v61 = vpop.f32.mrf.mxu1 }
 0x2aa   : > { %v2321_v55 = vadd.f32 %v2297_v61, %v2050_v10  ;;  %3334 = vmatprep.mubr.msk.bf16.mxu1 %vm781_vm7, %v2520_v33  ;;  %v2513_v7 = vadd.f32 %v4229_v15, %v2491_v11  ;;  %v2523_v19 = vpack.c.bf16 %v2515_v41, %v2515_v41 }
 0x2ab   : > { %3335 = vmatmul.mubr.msk.bf16.gmra.mxu1 %vm781_vm7, %v2521_v35 }
 0x2ac   : > { %v2492_v5 = vadd.f32 %v2468_v37, %v2321_v55 }
 0x2ae   : > { %v2514_v59 = vadd.f32 %v4229_v15, %v2492_v5 }
 0x2b0   : > { %v2522_v49 = vpack.c.bf16 %v2514_v59, %v2513_v7 }
 0x2b2   : > { %3338 = vmatprep.mubr.msk.bf16.mxu1 %vm781_vm7, %v2522_v49 }
 0x2b3   : > { %3339 = vmatmul.mubr.msk.bf16.gmra.mxu1 %vm781_vm7, %v2523_v19 }
 0x35b   : > { %v3328_v45 = vpop.f32.mrf.mxu1 }
 0x35c   : > { %v2613_v32 = vadd.f32 %v3328_v45, %v2966_v20 }
 0x35d   : > { %v2605_v63 = vpop.f32.mrf.mxu1 }
 0x35e   : > { %v2666_v46 = vadd.f32 %v2977_v51, %v2613_v32  ;;  %v2606_v15 = vadd.f32 %v2966_v20, %v2605_v63 }
 0x35f   : > { %v3329_v17 = vpop.f32.mrf.mxu1 }
 0x360   : > { %v2667_v39 = vmax.f32 %v2666_v46, 0.0  ;;  %v2661_v0 = vadd.f32 %v2660_v18, %v2606_v15 }
 0x361   : > { %v2608_v50 = vpop.f32.mrf.mxu1 }
 0x362   : > { %2978 = vst [vmem:[%s4293_s14 + $0x8] sm:$0xff] %v2667_v39  ;;  %v2662_v36 = vmax.f32 %v2661_v0, 0.0 }
 0x363   : > { %v3332_v57 = vpop.f32.mrf.mxu1 }
 0x364   : > { %2663 = vst [vmem:[%s4293_s14] sm:$0xff] %v2662_v36  ;;  %v2627_v27 = vadd.f32 %v3332_v57, %v2966_v20 }
 0x365   : > { %v2619_v23 = vpop.f32.mrf.mxu1 }
 0x366   : > { %v2678_v31 = vadd.f32 %v2981_v21, %v2627_v27  ;;  %v2620_v43 = vadd.f32 %v2966_v20, %v2619_v23 }
 0x367   : > { %v3333_v47 = vpop.f32.mrf.mxu1 }
 0x368   : > { %v2679_v24 = vmax.f32 %v2678_v31, 0.0  ;;  %v2672_v44 = vadd.f32 %v2979_v38, %v2620_v43 }
 0x369   : > { %v2622_v25 = vpop.f32.mrf.mxu1 }
 0x36a   : > { %2982 = vst [vmem:[%s4293_s14 + $0x18] sm:$0xff] %v2679_v24  ;;  %v2673_v34 = vmax.f32 %v2672_v44, 0.0 }
 0x36b   : > { %v3336_v30 = vpop.f32.mrf.mxu1 }
 0x36c   : > { %2980 = vst [vmem:[%s4293_s14 + $0x10] sm:$0xff] %v2673_v34  ;;  %v2641_v40 = vadd.f32 %v3336_v30, %v2966_v20 }
 0x36d   : > { %v2633_v56 = vpop.f32.mrf.mxu1 }
 0x36e   : > { %v2690_v48 = vadd.f32 %v2985_v1, %v2641_v40  ;;  %v2634_v42 = vadd.f32 %v2966_v20, %v2633_v56 }
 0x36f   : > { %v3337_v14 = vpop.f32.mrf.mxu1 }
 0x370   : > { %v2691_v54 = vmax.f32 %v2690_v48, 0.0  ;;  %v2684_v52 = vadd.f32 %v2983_v53, %v2634_v42 }
 0x371   : > { %v2636_v22 = vpop.f32.mrf.mxu1 }
 0x372   : > { %2986 = vst [vmem:[%s4293_s14 + $0x28] sm:$0xff] %v2691_v54  ;;  %v2685_v60 = vmax.f32 %v2684_v52, 0.0 }
 0x373   : > { %v3340_v16 = vpop.f32.mrf.mxu1 }
 0x374   : > { %2984 = vst [vmem:[%s4293_s14 + $0x20] sm:$0xff] %v2685_v60  ;;  %v2655_v13 = vadd.f32 %v3340_v16, %v2966_v20 }
 0x375   : > { %v2647_v9 = vpop.f32.mrf.mxu1 }
 0x376   : > { %v2702_v3 = vadd.f32 %v2989_v2, %v2655_v13  ;;  %v2648_v4 = vadd.f32 %v2966_v20, %v2647_v9 }
 0x377   : > { %v3341_v26 = vpop.f32.mrf.mxu1 }
 0x378   : > { %v2703_v29 = vmax.f32 %v2702_v3, 0.0  ;;  %v2696_v35 = vadd.f32 %v2987_v58, %v2648_v4 }
 0x379   : > { %v2650_v12 = vpop.f32.mrf.mxu1 }
 0x37a   : > { %2990 = vst [vmem:[%s4293_s14 + $0x38] sm:$0xff] %v2703_v29  ;;  %v2697_v28 = vmax.f32 %v2696_v35, 0.0 }
 0x37c   : > { %2988 = vst [vmem:[%s4293_s14 + $0x30] sm:$0xff] %v2697_v28 }
 0x37d   : > { %3549 = shalt.err (!%p3546_p0)
}
 0x37e   : > { %s3550_s29 = scalar_lea.hbm %s4314_s23, 1024  ;;  %s3554_s19 = scalar_lea.hbm %s4366_s7, 2048 }
 0x37f   : > { %p3551_p5 = scmp.ne.s32.totalorder %s4314_s23, %s3550_s29  ;;  %p3555_p4 = scmp.lt.s32.totalorder %s4314_s23, %s4366_s7 }
 0x380   : > { %p3556_p6 = scmp.lt.s32.totalorder %s3554_s19, %s3550_s29 }
 0x381   : > { %p3552_p9 = pnand %p3551_p5, %p4390_p11 }
 0x382   : > { %p3557_p8 = por %p3556_p6, %p3555_p4 }
 0x383   : > { %p3553_p1 = pneg %p3552_p9 }
 0x385   : > { %p3558_p3 = pnand %p3557_p8, %p3553_p1 }
 0x387   : > { %3561 = shalt.err (!%p3558_p3)
}
 0x388   : > { %s3614_s30 = smov 128   ;;  %s3615_s17 = smov 8  }
 0x389   : > { %3352 = dma.vmem_to_hbm [thread:$0]  (%p4390_p11), %s4309_s3, 1024, %s4314_s23, %s2707_s16, %s3614_s30, %s3614_s30, %s3615_s17  }
 0x38a PF: > { %s2735_s11 = sand.u32 1, %s3592_s24   ;;  %p4391_p7 = scmp.ne.s32.totalorder %s4373_s8, 0 }
 0x38b   : > { %p4392_p12 = scmp.ge.s32.totalorder %s3604_s27, 2  ;;  %s2736_s28 = scalar_lea.sflag [#allocation5], %s2735_s11 }
 0x38d   : > { %p3363_p10 = pnand %p4392_p12, %p4391_p7 }
 0x38f   : > { %p3364_p2 = pneg %p3363_p10 }
 0x391   : > { %3587 = dma.done.wait (%p3364_p2), %s2736_s28, 1024  }
 0x392   : > { %3589 = vsyncadd (%p3364_p2), %s2736_s28, 4294966272  ;;  %p21_p13 = scmp.ge.s32.totalorder %s3710_s13, 4   ;;  %s4393_s24 = smov %s3596_s25 }
 0x393   : > { %s4394_s25 = smov %s3600_s26  ;;  %s4395_s26 = smov %s3727_s21 }
 0x394   : > { %s4396_s27 = smov %s3710_s13  ;;  %23 = sbr.rel (!%p21_p13) target bundleno = 8 (0x8), region = 119 }
 0x399   :  { %2741 = vsyncpa [#allocation4], 1 }
 0x39a   :  { %2743 = vsyncpa [#allocation4 + $0x1], 1 }
 0x39b   :  { %2744 = vsyncpa [#allocation7], 1 }
 0x39c   :  { %2745 = vsyncpa [#allocation5], 1 }
 0x39d   :  { %2747 = vsyncpa [#allocation5 + $0x1], 1 }

</bundles_post_ra>
